<compile_context>
chip_gen: v7x
topology: tpu7x:2x2x1
jax: 0.10.0
libtpu: 0.0.40
codegen_flags: <defaults>
</compile_context>

<pallas_src>
import math
from functools import partial

import jax
import jax.numpy as jnp
from jax.experimental import pallas as pl
from jax.experimental.pallas import tpu as pltpu

LN_EPS = 1e-5
MASK_NEG = -1e30  # additive mask value; exp() underflows to exactly 0


# ---------------------------------------------------------------------------
# In-kernel helpers (traced inside the Pallas kernels)
# ---------------------------------------------------------------------------

def _layernorm(x, g, b):
    mean = jnp.mean(x, axis=-1, keepdims=True)
    var = jnp.mean(jnp.square(x - mean), axis=-1, keepdims=True)
    return (x - mean) * jax.lax.rsqrt(var + LN_EPS) * g + b


def _mha_heads(y, kv, mask_ref, wq, bq, wk, bk, wv, bv, t_ref, *, h, dk, mask_h):
    """Q from y (Sq, D); K/V from kv (Sk, D). Writes per-head context (Sq, dk)
    into t_ref[0, head] (natural (B, H, Sq, dk) layout)."""
    q = jnp.dot(y, wq, preferred_element_type=jnp.float32) + bq       # (Sq, D)
    k = jnp.dot(kv, wk, preferred_element_type=jnp.float32) + bk      # (Sk, D)
    v = jnp.dot(kv, wv, preferred_element_type=jnp.float32) + bv      # (Sk, D)
    scale = 1.0 / math.sqrt(dk)
    for head in range(h):
        sl = slice(head * dk, (head + 1) * dk)
        qh, kh, vh = q[:, sl], k[:, sl], v[:, sl]
        # scores (Sq, Sk) = qh @ kh.T  (rhs-transposed contraction)
        s = jax.lax.dot_general(qh, kh, (((1,), (1,)), ((), ())),
                                preferred_element_type=jnp.float32) * scale
        s = s + mask_ref[0, head if mask_h > 1 else 0]                 # additive mask
        m = jnp.max(s, axis=-1, keepdims=True)
        e = jnp.exp(s - m)
        p = e / jnp.sum(e, axis=-1, keepdims=True)
        t_ref[0, head, :, :] = jnp.dot(p, vh, preferred_element_type=jnp.float32)


# ---------------------------------------------------------------------------
# Fused kernels (one grid step == one batch element)
# ---------------------------------------------------------------------------

def _self_front_kernel(x_ref, mask_ref, g_ref, b_ref,
                       wq_ref, bq_ref, wk_ref, bk_ref, wv_ref, bv_ref,
                       t_ref, *, h, dk, mask_h):
    # y = LN0(x); self-attention per-head context -> t_ref
    x = x_ref[0].astype(jnp.float32)
    y = _layernorm(x, g_ref[...], b_ref[...])
    _mha_heads(y, y, mask_ref,
               wq_ref[...], bq_ref[...], wk_ref[...], bk_ref[...],
               wv_ref[...], bv_ref[...], t_ref, h=h, dk=dk, mask_h=mask_h)


def _mid_kernel(x_ref, m1_ref, enc_ref, mask_ref,
                wo_ref, bo_ref, g_ref, b_ref,
                wq_ref, bq_ref, wk_ref, bk_ref, wv_ref, bv_ref,
                x1_ref, t_ref, *, h, dk, mask_h):
    # x1 = x + merged_self @ Wo + bo;  y = LN1(x1);
    # cross-attention (K/V from raw encoder output) per-head context -> t_ref
    x = x_ref[0].astype(jnp.float32)
    m1 = m1_ref[0].astype(jnp.float32)
    x1 = x + jnp.dot(m1, wo_ref[...], preferred_element_type=jnp.float32) + bo_ref[...]
    x1_ref[0] = x1.astype(x1_ref.dtype)
    y = _layernorm(x1, g_ref[...], b_ref[...])
    enc = enc_ref[0].astype(jnp.float32)
    _mha_heads(y, enc, mask_ref,
               wq_ref[...], bq_ref[...], wk_ref[...], bk_ref[...],
               wv_ref[...], bv_ref[...], t_ref, h=h, dk=dk, mask_h=mask_h)


def _tail_kernel(x1_ref, m2_ref, wo_ref, bo_ref, g_ref, b_ref,
                 w1_ref, b1_ref, w2_ref, b2_ref, out_ref):
    # x2 = x1 + merged_cross @ Wo + bo;  out = x2 + FFN(LN2(x2))
    x1 = x1_ref[0].astype(jnp.float32)
    m2 = m2_ref[0].astype(jnp.float32)
    x2 = x1 + jnp.dot(m2, wo_ref[...], preferred_element_type=jnp.float32) + bo_ref[...]
    y = _layernorm(x2, g_ref[...], b_ref[...])
    hid = jnp.maximum(
        jnp.dot(y, w1_ref[...], preferred_element_type=jnp.float32) + b1_ref[...], 0.0)
    out = x2 + jnp.dot(hid, w2_ref[...], preferred_element_type=jnp.float32) + b2_ref[...]
    out_ref[0] = out.astype(out_ref.dtype)


# ---------------------------------------------------------------------------
# pallas_call wrappers
# ---------------------------------------------------------------------------

def _rep_spec(shape):
    n = len(shape)
    return pl.BlockSpec(shape, lambda b: (0,) * n)       # same (replicated) block for all steps


def _mask_spec(mask_add):
    mb, mh, sq, sk = mask_add.shape
    if mb > 1:
        return pl.BlockSpec((1, mh, sq, sk), lambda b: (b, 0, 0, 0))
    return pl.BlockSpec((1, mh, sq, sk), lambda b: (0, 0, 0, 0))


def fused_self_attn_front(x, mask_add, ln_g, ln_b, ap, h):
    B, Sq, D = x.shape
    dk = D // h
    kernel = partial(_self_front_kernel, h=h, dk=dk, mask_h=mask_add.shape[1])
    return pl.pallas_call(
        kernel,
        out_shape=jax.ShapeDtypeStruct((B, h, Sq, dk), jnp.float32),
        grid=(B,),
        in_specs=[
            pl.BlockSpec((1, Sq, D), lambda b: (b, 0, 0)),
            _mask_spec(mask_add),
            _rep_spec(ln_g.shape), _rep_spec(ln_b.shape),
            _rep_spec(ap["wq"].shape), _rep_spec(ap["bq"].shape),
            _rep_spec(ap["wk"].shape), _rep_spec(ap["bk"].shape),
            _rep_spec(ap["wv"].shape), _rep_spec(ap["bv"].shape),
        ],
        out_specs=pl.BlockSpec((1, h, Sq, dk), lambda b: (b, 0, 0, 0)),
        compiler_params=pltpu.CompilerParams(dimension_semantics=("parallel",)),
    )(x, mask_add, ln_g, ln_b,
      ap["wq"], ap["bq"], ap["wk"], ap["bk"], ap["wv"], ap["bv"])


def fused_attn_out_cross_front(x, m1, enc, mask_add, wo, bo, ln_g, ln_b, ap, h):
    B, Sq, D = x.shape
    Sk = enc.shape[1]
    dk = D // h
    kernel = partial(_mid_kernel, h=h, dk=dk, mask_h=mask_add.shape[1])
    return pl.pallas_call(
        kernel,
        out_shape=(jax.ShapeDtypeStruct((B, Sq, D), x.dtype),
                   jax.ShapeDtypeStruct((B, h, Sq, dk), jnp.float32)),
        grid=(B,),
        in_specs=[
            pl.BlockSpec((1, Sq, D), lambda b: (b, 0, 0)),     # x (residual source)
            pl.BlockSpec((1, Sq, D), lambda b: (b, 0, 0)),     # merged self-attn ctx
            pl.BlockSpec((1, Sk, D), lambda b: (b, 0, 0)),     # encoder output (raw)
            _mask_spec(mask_add),
            _rep_spec(wo.shape), _rep_spec(bo.shape),
            _rep_spec(ln_g.shape), _rep_spec(ln_b.shape),
            _rep_spec(ap["wq"].shape), _rep_spec(ap["bq"].shape),
            _rep_spec(ap["wk"].shape), _rep_spec(ap["bk"].shape),
            _rep_spec(ap["wv"].shape), _rep_spec(ap["bv"].shape),
        ],
        out_specs=(pl.BlockSpec((1, Sq, D), lambda b: (b, 0, 0)),
                   pl.BlockSpec((1, h, Sq, dk), lambda b: (b, 0, 0, 0))),
        compiler_params=pltpu.CompilerParams(dimension_semantics=("parallel",)),
    )(x, m1, enc, mask_add, wo, bo, ln_g, ln_b,
      ap["wq"], ap["bq"], ap["wk"], ap["bk"], ap["wv"], ap["bv"])


def fused_attn_out_ffn(x1, m2, wo, bo, ln_g, ln_b, fp):
    B, Sq, D = x1.shape
    return pl.pallas_call(
        _tail_kernel,
        out_shape=jax.ShapeDtypeStruct((B, Sq, D), x1.dtype),
        grid=(B,),
        in_specs=[
            pl.BlockSpec((1, Sq, D), lambda b: (b, 0, 0)),
            pl.BlockSpec((1, Sq, D), lambda b: (b, 0, 0)),
            _rep_spec(wo.shape), _rep_spec(bo.shape),
            _rep_spec(ln_g.shape), _rep_spec(ln_b.shape),
            _rep_spec(fp["w1"].shape), _rep_spec(fp["b1"].shape),
            _rep_spec(fp["w2"].shape), _rep_spec(fp["b2"].shape),
        ],
        out_specs=pl.BlockSpec((1, Sq, D), lambda b: (b, 0, 0)),
        compiler_params=pltpu.CompilerParams(dimension_semantics=("parallel",)),
    )(x1, m2, wo, bo, ln_g, ln_b, fp["w1"], fp["b1"], fp["w2"], fp["b2"])


# ---------------------------------------------------------------------------
# JAX-level glue (quirky head merge of the reference + mask prep)
# ---------------------------------------------------------------------------

def _merge_heads(t):
    # Reproduce PyTorch's attention_score.transpose(-1, -2).reshape(B, Sq, d_model)
    B, H, Sq, dk = t.shape
    return t.transpose(0, 1, 3, 2).reshape(B, Sq, H * dk)


def _additive_mask(mask, Sq, Sk):
    m = jnp.asarray(mask)                       # (mb, mh, 1|Sq, Sk), 1 = keep, 0 = masked
    mb, mh = m.shape[0], m.shape[1]
    m = jnp.broadcast_to(m, (mb, mh, Sq, Sk))
    return jnp.where(m == 0, jnp.float32(MASK_NEG), jnp.float32(0.0))


def decoder_block(p, x, enc, src_mask_add, tgt_mask_add, h):
    t1 = fused_self_attn_front(x, tgt_mask_add, p["ln0_g"], p["ln0_b"], p["self_attn"], h)
    m1 = _merge_heads(t1).astype(x.dtype)
    x1, t2 = fused_attn_out_cross_front(
        x, m1, enc, src_mask_add,
        p["self_attn"]["wo"], p["self_attn"]["bo"],
        p["ln1_g"], p["ln1_b"], p["cross_attn"], h)
    m2 = _merge_heads(t2).astype(x.dtype)
    return fused_attn_out_ffn(x1, m2, p["cross_attn"]["wo"], p["cross_attn"]["bo"],
                              p["ln2_g"], p["ln2_b"], p["ffn"])


def decoder(layers_params, x, encoder_input, src_mask, tgt_mask, h):
    B, Sq, D = x.shape
    Sk = encoder_input.shape[1]
    tgt_add = _additive_mask(tgt_mask, Sq, Sq)
    src_add = _additive_mask(src_mask, Sq, Sk)
    for p in layers_params:
        x = decoder_block(p, x, encoder_input, src_add, tgt_add, h)
    return x


# ---------------------------------------------------------------------------
# Deterministic parameter init (weights stored as (in, out); y = x @ w + b)
# ---------------------------------------------------------------------------

def _init_linear(key, d_in, d_out):
    kw, kb = jax.random.split(key)
    w = jax.random.normal(kw, (d_in, d_out), jnp.float32) * (1.0 / math.sqrt(d_in))
    b = jax.random.normal(kb, (1, d_out), jnp.float32) * 0.01
    return w, b


def _init_mha(key, d_model):
    ks = jax.random.split(key, 4)
    p = {}
    for name, kk in zip(["q", "k", "v", "o"], ks):
        w, b = _init_linear(kk, d_model, d_model)
        p["w" + name], p["b" + name] = w, b
    return p


def _init_block(key, d_model, d_ff):
    ks = jax.random.split(key, 4)
    w1, b1 = _init_linear(ks[2], d_model, d_ff)
    w2, b2 = _init_linear(ks[3], d_ff, d_model)
    return {
        "self_attn": _init_mha(ks[0], d_model),
        "cross_attn": _init_mha(ks[1], d_model),
        "ffn": {"w1": w1, "b1": b1, "w2": w2, "b2": b2},
        "ln0_g": jnp.ones((1, d_model), jnp.float32),
        "ln0_b": jnp.zeros((1, d_model), jnp.float32),
        "ln1_g": jnp.ones((1, d_model), jnp.float32),
        "ln1_b": jnp.zeros((1, d_model), jnp.float32),
        "ln2_g": jnp.ones((1, d_model), jnp.float32),
        "ln2_b": jnp.zeros((1, d_model), jnp.float32),
    }


# ---------------------------------------------------------------------------
# Pure-JAX reference (mirrors the PyTorch module) for an in-script self-check
# ---------------------------------------------------------------------------

def _ref_decoder(layers_params, x, enc, src_mask, tgt_mask, h):
    HP = jax.lax.Precision.HIGHEST

    def ln(v, g, b):
        mu = jnp.mean(v, -1, keepdims=True)
        var = jnp.mean(jnp.square(v - mu), -1, keepdims=True)
        return (v - mu) / jnp.sqrt(var + LN_EPS) * g + b

    def mha(p, q_in, kv_in, mask):
        B, Sq, D = q_in.shape
        Sk = kv_in.shape[1]
        dk = D // h
        q = jnp.matmul(q_in, p["wq"], precision=HP) + p["bq"]
        k = jnp.matmul(kv_in, p["wk"], precision=HP) + p["bk"]
        v = jnp.matmul(kv_in, p["wv"], precision=HP) + p["bv"]
        q = q.reshape(B, Sq, h, dk).transpose(0, 2, 1, 3)
        k = k.reshape(B, Sk, h, dk).transpose(0, 2, 1, 3)
        v = v.reshape(B, Sk, h, dk).transpose(0, 2, 1, 3)
        s = jnp.matmul(q, jnp.swapaxes(k, -1, -2), precision=HP) / math.sqrt(dk)
        s = jnp.where(mask == 0, -jnp.inf, s)
        a = jax.nn.softmax(s, axis=-1)
        o = jnp.matmul(a, v, precision=HP)
        o = jnp.swapaxes(o, -1, -2).reshape(B, Sq, D)      # the quirky merge
        return jnp.matmul(o, p["wo"], precision=HP) + p["bo"]

    for p in layers_params:
        y = ln(x, p["ln0_g"], p["ln0_b"])
        x = x + mha(p["self_attn"], y, y, tgt_mask)
        y = ln(x, p["ln1_g"], p["ln1_b"])
        x = x + mha(p["cross_attn"], y, enc, src_mask)
        y = ln(x, p["ln2_g"], p["ln2_b"])
        f = p["ffn"]
        hid = jnp.maximum(jnp.matmul(y, f["w1"], precision=HP) + f["b1"], 0.0)
        x = x + jnp.matmul(hid, f["w2"], precision=HP) + f["b2"]
    return x


# ---------------------------------------------------------------------------
# Demo
# ---------------------------------------------------------------------------

if __name__ == "__main__":
    N = 2            # number of decoder layers (small)
    d_model = 32
    h = 4
    d_ff = 64
    B, S_dec, S_enc = 2, 8, 8

    key = jax.random.PRNGKey(0)
    k_x, k_enc, *k_layers = jax.random.split(key, 2 + N)

    x = jax.random.normal(k_x, (B, S_dec, d_model), jnp.float32)
    encoder_input = jax.random.normal(k_enc, (B, S_enc, d_model), jnp.float32)

    # masks: 1 = keep, 0 = masked (matches masked_fill_(mask == 0, -inf))
    tgt_mask = jnp.tril(jnp.ones((S_dec, S_dec), jnp.int32))[None, None]   # (1,1,S,S) causal
    src_mask = jnp.ones((1, 1, 1, S_enc), jnp.int32)                       # no masking

    layers_params = [_init_block(kk, d_model, d_ff) for kk in k_layers]

    fwd = jax.jit(partial(decoder, h=h))
    out = fwd(layers_params, x, encoder_input, src_mask, tgt_mask)
    jax.block_until_ready(out)

    assert out.shape == (B, S_dec, d_model) and out.dtype == jnp.float32

    ref = _ref_decoder(layers_params, x, encoder_input, src_mask, tgt_mask, h)
    err = float(jnp.max(jnp.abs(out - ref)))
    assert err < 1e-2, f"Pallas decoder mismatch vs reference: max abs err = {err}"

    print("KERNEL_OK")
</pallas_src>

<mosaic_0001>
module attributes {stable_mosaic.version = 11 : i64} {
  func.func @_self_front_kernel(%arg0: i32, %arg1: memref<1x8x32xf32, #tpu.memory_space<vmem>>, %arg2: memref<1x1x8x8xf32, #tpu.memory_space<vmem>>, %arg3: memref<1x32xf32, #tpu.memory_space<vmem>>, %arg4: memref<1x32xf32, #tpu.memory_space<vmem>>, %arg5: memref<32x32xf32, #tpu.memory_space<vmem>>, %arg6: memref<1x32xf32, #tpu.memory_space<vmem>>, %arg7: memref<32x32xf32, #tpu.memory_space<vmem>>, %arg8: memref<1x32xf32, #tpu.memory_space<vmem>>, %arg9: memref<32x32xf32, #tpu.memory_space<vmem>>, %arg10: memref<1x32xf32, #tpu.memory_space<vmem>>, %arg11: memref<1x4x8x8xf32, #tpu.memory_space<vmem>>) attributes {dimension_semantics = [#tpu.dimension_semantics<parallel>], iteration_bounds = array<i64: 2>, scalar_prefetch = 0 : i64, scratch_operands = 0 : i64, tpu.core_type = #tpu.core_type<tc>, window_params = [{transform_indices = @transform_0, window_bounds = array<i64: 1, 8, 32>}, {pipeline_mode = #tpu.pipeline_mode<synchronous>, transform_indices = @transform_1, window_bounds = array<i64: 1, 1, 8, 8>}, {pipeline_mode = #tpu.pipeline_mode<synchronous>, transform_indices = @transform_2, window_bounds = array<i64: 1, 32>}, {pipeline_mode = #tpu.pipeline_mode<synchronous>, transform_indices = @transform_3, window_bounds = array<i64: 1, 32>}, {pipeline_mode = #tpu.pipeline_mode<synchronous>, transform_indices = @transform_4, window_bounds = array<i64: 32, 32>}, {pipeline_mode = #tpu.pipeline_mode<synchronous>, transform_indices = @transform_5, window_bounds = array<i64: 1, 32>}, {pipeline_mode = #tpu.pipeline_mode<synchronous>, transform_indices = @transform_6, window_bounds = array<i64: 32, 32>}, {pipeline_mode = #tpu.pipeline_mode<synchronous>, transform_indices = @transform_7, window_bounds = array<i64: 1, 32>}, {pipeline_mode = #tpu.pipeline_mode<synchronous>, transform_indices = @transform_8, window_bounds = array<i64: 32, 32>}, {pipeline_mode = #tpu.pipeline_mode<synchronous>, transform_indices = @transform_9, window_bounds = array<i64: 1, 32>}, {transform_indices = @transform_10, window_bounds = array<i64: 1, 4, 8, 8>}]} {
    %c0 = arith.constant 0 : index
    %c0_0 = arith.constant 0 : index
    %c0_1 = arith.constant 0 : index
    %0 = vector.load %arg1[%c0, %c0_0, %c0_1] : memref<1x8x32xf32, #tpu.memory_space<vmem>>, vector<1x8x32xf32>
    %1 = vector.shape_cast %0 : vector<1x8x32xf32> to vector<8x32xf32>
    %c0_2 = arith.constant 0 : index
    %c0_3 = arith.constant 0 : index
    %2 = vector.load %arg3[%c0_2, %c0_3] : memref<1x32xf32, #tpu.memory_space<vmem>>, vector<1x32xf32>
    %c0_4 = arith.constant 0 : index
    %c0_5 = arith.constant 0 : index
    %3 = vector.load %arg4[%c0_4, %c0_5] : memref<1x32xf32, #tpu.memory_space<vmem>>, vector<1x32xf32>
    %cst = arith.constant dense<0.000000e+00> : vector<8xf32>
    %4 = vector.multi_reduction <add>, %1, %cst [1] : vector<8x32xf32> to vector<8xf32>
    %5 = vector.shape_cast %4 : vector<8xf32> to vector<8x1xf32>
    %cst_6 = arith.constant 3.200000e+01 : f32
    %6 = vector.broadcast %cst_6 : f32 to vector<8x1xf32>
    %7 = arith.divf %5, %6 : vector<8x1xf32>
    %8 = vector.broadcast %7 : vector<8x1xf32> to vector<8x32xf32>
    %9 = arith.subf %1, %8 : vector<8x32xf32>
    %10 = arith.mulf %9, %9 : vector<8x32xf32>
    %cst_7 = arith.constant dense<0.000000e+00> : vector<8xf32>
    %11 = vector.multi_reduction <add>, %10, %cst_7 [1] : vector<8x32xf32> to vector<8xf32>
    %12 = vector.shape_cast %11 : vector<8xf32> to vector<8x1xf32>
    %cst_8 = arith.constant 3.200000e+01 : f32
    %13 = vector.broadcast %cst_8 : f32 to vector<8x1xf32>
    %14 = arith.divf %12, %13 : vector<8x1xf32>
    %15 = vector.broadcast %7 : vector<8x1xf32> to vector<8x32xf32>
    %16 = arith.subf %1, %15 : vector<8x32xf32>
    %cst_9 = arith.constant 9.99999974E-6 : f32
    %17 = vector.broadcast %cst_9 : f32 to vector<8x1xf32>
    %18 = arith.addf %14, %17 : vector<8x1xf32>
    %19 = math.rsqrt %18 : vector<8x1xf32>
    %20 = vector.broadcast %19 : vector<8x1xf32> to vector<8x32xf32>
    %21 = arith.mulf %16, %20 : vector<8x32xf32>
    %22 = vector.broadcast %2 : vector<1x32xf32> to vector<8x32xf32>
    %23 = arith.mulf %21, %22 : vector<8x32xf32>
    %24 = vector.broadcast %3 : vector<1x32xf32> to vector<8x32xf32>
    %25 = arith.addf %23, %24 : vector<8x32xf32>
    %c0_10 = arith.constant 0 : index
    %c0_11 = arith.constant 0 : index
    %26 = vector.load %arg5[%c0_10, %c0_11] : memref<32x32xf32, #tpu.memory_space<vmem>>, vector<32x32xf32>
    %c0_12 = arith.constant 0 : index
    %c0_13 = arith.constant 0 : index
    %27 = vector.load %arg6[%c0_12, %c0_13] : memref<1x32xf32, #tpu.memory_space<vmem>>, vector<1x32xf32>
    %c0_14 = arith.constant 0 : index
    %c0_15 = arith.constant 0 : index
    %28 = vector.load %arg7[%c0_14, %c0_15] : memref<32x32xf32, #tpu.memory_space<vmem>>, vector<32x32xf32>
    %c0_16 = arith.constant 0 : index
    %c0_17 = arith.constant 0 : index
    %29 = vector.load %arg8[%c0_16, %c0_17] : memref<1x32xf32, #tpu.memory_space<vmem>>, vector<1x32xf32>
    %c0_18 = arith.constant 0 : index
    %c0_19 = arith.constant 0 : index
    %30 = vector.load %arg9[%c0_18, %c0_19] : memref<32x32xf32, #tpu.memory_space<vmem>>, vector<32x32xf32>
    %c0_20 = arith.constant 0 : index
    %c0_21 = arith.constant 0 : index
    %31 = vector.load %arg10[%c0_20, %c0_21] : memref<1x32xf32, #tpu.memory_space<vmem>>, vector<1x32xf32>
    %cst_22 = arith.constant dense<0.000000e+00> : vector<8x32xf32>
    %32 = tpu.matmul %25, %26, %cst_22 {dimension_numbers = #tpu.dot_dimension_numbers<[1], [0], [0], [1], [0, 0, 1, 1], [], []>} : vector<8x32xf32>, vector<32x32xf32>, vector<8x32xf32> -> vector<8x32xf32>
    %33 = vector.broadcast %27 : vector<1x32xf32> to vector<8x32xf32>
    %34 = arith.addf %32, %33 : vector<8x32xf32>
    %cst_23 = arith.constant dense<0.000000e+00> : vector<8x32xf32>
    %35 = tpu.matmul %25, %28, %cst_23 {dimension_numbers = #tpu.dot_dimension_numbers<[1], [0], [0], [1], [0, 0, 1, 1], [], []>} : vector<8x32xf32>, vector<32x32xf32>, vector<8x32xf32> -> vector<8x32xf32>
    %36 = vector.broadcast %29 : vector<1x32xf32> to vector<8x32xf32>
    %37 = arith.addf %35, %36 : vector<8x32xf32>
    %cst_24 = arith.constant dense<0.000000e+00> : vector<8x32xf32>
    %38 = tpu.matmul %25, %30, %cst_24 {dimension_numbers = #tpu.dot_dimension_numbers<[1], [0], [0], [1], [0, 0, 1, 1], [], []>} : vector<8x32xf32>, vector<32x32xf32>, vector<8x32xf32> -> vector<8x32xf32>
    %39 = vector.broadcast %31 : vector<1x32xf32> to vector<8x32xf32>
    %40 = arith.addf %38, %39 : vector<8x32xf32>
    %41 = vector.extract_strided_slice %34 {offsets = [0, 0], sizes = [8, 8], strides = [1, 1]} : vector<8x32xf32> to vector<8x8xf32>
    %42 = vector.extract_strided_slice %37 {offsets = [0, 0], sizes = [8, 8], strides = [1, 1]} : vector<8x32xf32> to vector<8x8xf32>
    %43 = vector.extract_strided_slice %40 {offsets = [0, 0], sizes = [8, 8], strides = [1, 1]} : vector<8x32xf32> to vector<8x8xf32>
    %cst_25 = arith.constant dense<0.000000e+00> : vector<8x8xf32>
    %44 = tpu.matmul %41, %42, %cst_25 {dimension_numbers = #tpu.dot_dimension_numbers<[1], [1], [0], [0], [0, 0, 1, 0], [], []>} : vector<8x8xf32>, vector<8x8xf32>, vector<8x8xf32> -> vector<8x8xf32>
    %cst_26 = arith.constant 0.353553385 : f32
    %45 = vector.broadcast %cst_26 : f32 to vector<8x8xf32>
    %46 = arith.mulf %44, %45 : vector<8x8xf32>
    %c0_27 = arith.constant 0 : index
    %c0_28 = arith.constant 0 : index
    %c0_29 = arith.constant 0 : index
    %c0_30 = arith.constant 0 : index
    %47 = vector.load %arg2[%c0_27, %c0_28, %c0_29, %c0_30] : memref<1x1x8x8xf32, #tpu.memory_space<vmem>>, vector<1x1x8x8xf32>
    %48 = vector.shape_cast %47 : vector<1x1x8x8xf32> to vector<8x8xf32>
    %49 = arith.addf %46, %48 : vector<8x8xf32>
    %cst_31 = arith.constant dense<0xFF800000> : vector<8xf32>
    %50 = vector.multi_reduction <maximumf>, %49, %cst_31 [1] : vector<8x8xf32> to vector<8xf32>
    %51 = vector.shape_cast %50 : vector<8xf32> to vector<8x1xf32>
    %52 = vector.broadcast %51 : vector<8x1xf32> to vector<8x8xf32>
    %53 = arith.subf %49, %52 : vector<8x8xf32>
    %54 = math.exp %53 : vector<8x8xf32>
    %cst_32 = arith.constant dense<0.000000e+00> : vector<8xf32>
    %55 = vector.multi_reduction <add>, %54, %cst_32 [1] : vector<8x8xf32> to vector<8xf32>
    %56 = vector.shape_cast %55 : vector<8xf32> to vector<8x1xf32>
    %57 = vector.broadcast %56 : vector<8x1xf32> to vector<8x8xf32>
    %58 = arith.divf %54, %57 : vector<8x8xf32>
    %cst_33 = arith.constant dense<0.000000e+00> : vector<8x8xf32>
    %59 = tpu.matmul %58, %43, %cst_33 {dimension_numbers = #tpu.dot_dimension_numbers<[1], [0], [0], [1], [0, 0, 1, 1], [], []>} : vector<8x8xf32>, vector<8x8xf32>, vector<8x8xf32> -> vector<8x8xf32>
    %c0_34 = arith.constant 0 : index
    %c0_35 = arith.constant 0 : index
    %c0_36 = arith.constant 0 : index
    %c0_37 = arith.constant 0 : index
    %60 = vector.load %arg11[%c0_34, %c0_35, %c0_36, %c0_37] : memref<1x4x8x8xf32, #tpu.memory_space<vmem>>, vector<1x1x8x8xf32>
    %61 = vector.shape_cast %60 : vector<1x1x8x8xf32> to vector<8x8xf32>
    %62 = vector.shape_cast %59 : vector<8x8xf32> to vector<1x1x8x8xf32>
    tpu.vector_store %arg11[%c0_34, %c0_35, %c0_36, %c0_37], %62 {strides = array<i32>} : memref<1x4x8x8xf32, #tpu.memory_space<vmem>>, vector<1x1x8x8xf32>,
    %63 = vector.extract_strided_slice %34 {offsets = [0, 8], sizes = [8, 8], strides = [1, 1]} : vector<8x32xf32> to vector<8x8xf32>
    %64 = vector.extract_strided_slice %37 {offsets = [0, 8], sizes = [8, 8], strides = [1, 1]} : vector<8x32xf32> to vector<8x8xf32>
    %65 = vector.extract_strided_slice %40 {offsets = [0, 8], sizes = [8, 8], strides = [1, 1]} : vector<8x32xf32> to vector<8x8xf32>
    %cst_38 = arith.constant dense<0.000000e+00> : vector<8x8xf32>
    %66 = tpu.matmul %63, %64, %cst_38 {dimension_numbers = #tpu.dot_dimension_numbers<[1], [1], [0], [0], [0, 0, 1, 0], [], []>} : vector<8x8xf32>, vector<8x8xf32>, vector<8x8xf32> -> vector<8x8xf32>
    %cst_39 = arith.constant 0.353553385 : f32
    %67 = vector.broadcast %cst_39 : f32 to vector<8x8xf32>
    %68 = arith.mulf %66, %67 : vector<8x8xf32>
    %c0_40 = arith.constant 0 : index
    %c0_41 = arith.constant 0 : index
    %c0_42 = arith.constant 0 : index
    %c0_43 = arith.constant 0 : index
    %69 = vector.load %arg2[%c0_40, %c0_41, %c0_42, %c0_43] : memref<1x1x8x8xf32, #tpu.memory_space<vmem>>, vector<1x1x8x8xf32>
    %70 = vector.shape_cast %69 : vector<1x1x8x8xf32> to vector<8x8xf32>
    %71 = arith.addf %68, %70 : vector<8x8xf32>
    %cst_44 = arith.constant dense<0xFF800000> : vector<8xf32>
    %72 = vector.multi_reduction <maximumf>, %71, %cst_44 [1] : vector<8x8xf32> to vector<8xf32>
    %73 = vector.shape_cast %72 : vector<8xf32> to vector<8x1xf32>
    %74 = vector.broadcast %73 : vector<8x1xf32> to vector<8x8xf32>
    %75 = arith.subf %71, %74 : vector<8x8xf32>
    %76 = math.exp %75 : vector<8x8xf32>
    %cst_45 = arith.constant dense<0.000000e+00> : vector<8xf32>
    %77 = vector.multi_reduction <add>, %76, %cst_45 [1] : vector<8x8xf32> to vector<8xf32>
    %78 = vector.shape_cast %77 : vector<8xf32> to vector<8x1xf32>
    %79 = vector.broadcast %78 : vector<8x1xf32> to vector<8x8xf32>
    %80 = arith.divf %76, %79 : vector<8x8xf32>
    %cst_46 = arith.constant dense<0.000000e+00> : vector<8x8xf32>
    %81 = tpu.matmul %80, %65, %cst_46 {dimension_numbers = #tpu.dot_dimension_numbers<[1], [0], [0], [1], [0, 0, 1, 1], [], []>} : vector<8x8xf32>, vector<8x8xf32>, vector<8x8xf32> -> vector<8x8xf32>
    %c0_47 = arith.constant 0 : index
    %c1 = arith.constant 1 : index
    %c0_48 = arith.constant 0 : index
    %c0_49 = arith.constant 0 : index
    %82 = vector.load %arg11[%c0_47, %c1, %c0_48, %c0_49] : memref<1x4x8x8xf32, #tpu.memory_space<vmem>>, vector<1x1x8x8xf32>
    %83 = vector.shape_cast %82 : vector<1x1x8x8xf32> to vector<8x8xf32>
    %84 = vector.shape_cast %81 : vector<8x8xf32> to vector<1x1x8x8xf32>
    tpu.vector_store %arg11[%c0_47, %c1, %c0_48, %c0_49], %84 {strides = array<i32>} : memref<1x4x8x8xf32, #tpu.memory_space<vmem>>, vector<1x1x8x8xf32>,
    %85 = vector.extract_strided_slice %34 {offsets = [0, 16], sizes = [8, 8], strides = [1, 1]} : vector<8x32xf32> to vector<8x8xf32>
    %86 = vector.extract_strided_slice %37 {offsets = [0, 16], sizes = [8, 8], strides = [1, 1]} : vector<8x32xf32> to vector<8x8xf32>
    %87 = vector.extract_strided_slice %40 {offsets = [0, 16], sizes = [8, 8], strides = [1, 1]} : vector<8x32xf32> to vector<8x8xf32>
    %cst_50 = arith.constant dense<0.000000e+00> : vector<8x8xf32>
    %88 = tpu.matmul %85, %86, %cst_50 {dimension_numbers = #tpu.dot_dimension_numbers<[1], [1], [0], [0], [0, 0, 1, 0], [], []>} : vector<8x8xf32>, vector<8x8xf32>, vector<8x8xf32> -> vector<8x8xf32>
    %cst_51 = arith.constant 0.353553385 : f32
    %89 = vector.broadcast %cst_51 : f32 to vector<8x8xf32>
    %90 = arith.mulf %88, %89 : vector<8x8xf32>
    %c0_52 = arith.constant 0 : index
    %c0_53 = arith.constant 0 : index
    %c0_54 = arith.constant 0 : index
    %c0_55 = arith.constant 0 : index
    %91 = vector.load %arg2[%c0_52, %c0_53, %c0_54, %c0_55] : memref<1x1x8x8xf32, #tpu.memory_space<vmem>>, vector<1x1x8x8xf32>
    %92 = vector.shape_cast %91 : vector<1x1x8x8xf32> to vector<8x8xf32>
    %93 = arith.addf %90, %92 : vector<8x8xf32>
    %cst_56 = arith.constant dense<0xFF800000> : vector<8xf32>
    %94 = vector.multi_reduction <maximumf>, %93, %cst_56 [1] : vector<8x8xf32> to vector<8xf32>
    %95 = vector.shape_cast %94 : vector<8xf32> to vector<8x1xf32>
    %96 = vector.broadcast %95 : vector<8x1xf32> to vector<8x8xf32>
    %97 = arith.subf %93, %96 : vector<8x8xf32>
    %98 = math.exp %97 : vector<8x8xf32>
    %cst_57 = arith.constant dense<0.000000e+00> : vector<8xf32>
    %99 = vector.multi_reduction <add>, %98, %cst_57 [1] : vector<8x8xf32> to vector<8xf32>
    %100 = vector.shape_cast %99 : vector<8xf32> to vector<8x1xf32>
    %101 = vector.broadcast %100 : vector<8x1xf32> to vector<8x8xf32>
    %102 = arith.divf %98, %101 : vector<8x8xf32>
    %cst_58 = arith.constant dense<0.000000e+00> : vector<8x8xf32>
    %103 = tpu.matmul %102, %87, %cst_58 {dimension_numbers = #tpu.dot_dimension_numbers<[1], [0], [0], [1], [0, 0, 1, 1], [], []>} : vector<8x8xf32>, vector<8x8xf32>, vector<8x8xf32> -> vector<8x8xf32>
    %c0_59 = arith.constant 0 : index
    %c2 = arith.constant 2 : index
    %c0_60 = arith.constant 0 : index
    %c0_61 = arith.constant 0 : index
    %104 = vector.load %arg11[%c0_59, %c2, %c0_60, %c0_61] : memref<1x4x8x8xf32, #tpu.memory_space<vmem>>, vector<1x1x8x8xf32>
    %105 = vector.shape_cast %104 : vector<1x1x8x8xf32> to vector<8x8xf32>
    %106 = vector.shape_cast %103 : vector<8x8xf32> to vector<1x1x8x8xf32>
    tpu.vector_store %arg11[%c0_59, %c2, %c0_60, %c0_61], %106 {strides = array<i32>} : memref<1x4x8x8xf32, #tpu.memory_space<vmem>>, vector<1x1x8x8xf32>,
    %107 = vector.extract_strided_slice %34 {offsets = [0, 24], sizes = [8, 8], strides = [1, 1]} : vector<8x32xf32> to vector<8x8xf32>
    %108 = vector.extract_strided_slice %37 {offsets = [0, 24], sizes = [8, 8], strides = [1, 1]} : vector<8x32xf32> to vector<8x8xf32>
    %109 = vector.extract_strided_slice %40 {offsets = [0, 24], sizes = [8, 8], strides = [1, 1]} : vector<8x32xf32> to vector<8x8xf32>
    %cst_62 = arith.constant dense<0.000000e+00> : vector<8x8xf32>
    %110 = tpu.matmul %107, %108, %cst_62 {dimension_numbers = #tpu.dot_dimension_numbers<[1], [1], [0], [0], [0, 0, 1, 0], [], []>} : vector<8x8xf32>, vector<8x8xf32>, vector<8x8xf32> -> vector<8x8xf32>
    %cst_63 = arith.constant 0.353553385 : f32
    %111 = vector.broadcast %cst_63 : f32 to vector<8x8xf32>
    %112 = arith.mulf %110, %111 : vector<8x8xf32>
    %c0_64 = arith.constant 0 : index
    %c0_65 = arith.constant 0 : index
    %c0_66 = arith.constant 0 : index
    %c0_67 = arith.constant 0 : index
    %113 = vector.load %arg2[%c0_64, %c0_65, %c0_66, %c0_67] : memref<1x1x8x8xf32, #tpu.memory_space<vmem>>, vector<1x1x8x8xf32>
    %114 = vector.shape_cast %113 : vector<1x1x8x8xf32> to vector<8x8xf32>
    %115 = arith.addf %112, %114 : vector<8x8xf32>
    %cst_68 = arith.constant dense<0xFF800000> : vector<8xf32>
    %116 = vector.multi_reduction <maximumf>, %115, %cst_68 [1] : vector<8x8xf32> to vector<8xf32>
    %117 = vector.shape_cast %116 : vector<8xf32> to vector<8x1xf32>
    %118 = vector.broadcast %117 : vector<8x1xf32> to vector<8x8xf32>
    %119 = arith.subf %115, %118 : vector<8x8xf32>
    %120 = math.exp %119 : vector<8x8xf32>
    %cst_69 = arith.constant dense<0.000000e+00> : vector<8xf32>
    %121 = vector.multi_reduction <add>, %120, %cst_69 [1] : vector<8x8xf32> to vector<8xf32>
    %122 = vector.shape_cast %121 : vector<8xf32> to vector<8x1xf32>
    %123 = vector.broadcast %122 : vector<8x1xf32> to vector<8x8xf32>
    %124 = arith.divf %120, %123 : vector<8x8xf32>
    %cst_70 = arith.constant dense<0.000000e+00> : vector<8x8xf32>
    %125 = tpu.matmul %124, %109, %cst_70 {dimension_numbers = #tpu.dot_dimension_numbers<[1], [0], [0], [1], [0, 0, 1, 1], [], []>} : vector<8x8xf32>, vector<8x8xf32>, vector<8x8xf32> -> vector<8x8xf32>
    %c0_71 = arith.constant 0 : index
    %c3 = arith.constant 3 : index
    %c0_72 = arith.constant 0 : index
    %c0_73 = arith.constant 0 : index
    %126 = vector.load %arg11[%c0_71, %c3, %c0_72, %c0_73] : memref<1x4x8x8xf32, #tpu.memory_space<vmem>>, vector<1x1x8x8xf32>
    %127 = vector.shape_cast %126 : vector<1x1x8x8xf32> to vector<8x8xf32>
    %128 = vector.shape_cast %125 : vector<8x8xf32> to vector<1x1x8x8xf32>
    tpu.vector_store %arg11[%c0_71, %c3, %c0_72, %c0_73], %128 {strides = array<i32>} : memref<1x4x8x8xf32, #tpu.memory_space<vmem>>, vector<1x1x8x8xf32>,
    return
  }
  func.func @transform_0(%arg0: i32) -> (i32, i32, i32) {
    %c0_i32 = arith.constant 0 : i32
    %c0_i32_0 = arith.constant 0 : i32
    %c0_i32_1 = arith.constant 0 : i32
    return %arg0, %c0_i32, %c0_i32_0 : i32, i32, i32
  }
  func.func @transform_1(%arg0: i32) -> (i32, i32, i32, i32) {
    %c0_i32 = arith.constant 0 : i32
    %c0_i32_0 = arith.constant 0 : i32
    %c0_i32_1 = arith.constant 0 : i32
    %c0_i32_2 = arith.constant 0 : i32
    %c0_i32_3 = arith.constant 0 : i32
    return %c0_i32, %c0_i32_0, %c0_i32_1, %c0_i32_2 : i32, i32, i32, i32
  }
  func.func @transform_2(%arg0: i32) -> (i32, i32) {
    %c0_i32 = arith.constant 0 : i32
    %c0_i32_0 = arith.constant 0 : i32
    %c0_i32_1 = arith.constant 0 : i32
    return %c0_i32, %c0_i32_0 : i32, i32
  }
  func.func @transform_3(%arg0: i32) -> (i32, i32) {
    %c0_i32 = arith.constant 0 : i32
    %c0_i32_0 = arith.constant 0 : i32
    %c0_i32_1 = arith.constant 0 : i32
    return %c0_i32, %c0_i32_0 : i32, i32
  }
  func.func @transform_4(%arg0: i32) -> (i32, i32) {
    %c0_i32 = arith.constant 0 : i32
    %c0_i32_0 = arith.constant 0 : i32
    %c0_i32_1 = arith.constant 0 : i32
    return %c0_i32, %c0_i32_0 : i32, i32
  }
  func.func @transform_5(%arg0: i32) -> (i32, i32) {
    %c0_i32 = arith.constant 0 : i32
    %c0_i32_0 = arith.constant 0 : i32
    %c0_i32_1 = arith.constant 0 : i32
    return %c0_i32, %c0_i32_0 : i32, i32
  }
  func.func @transform_6(%arg0: i32) -> (i32, i32) {
    %c0_i32 = arith.constant 0 : i32
    %c0_i32_0 = arith.constant 0 : i32
    %c0_i32_1 = arith.constant 0 : i32
    return %c0_i32, %c0_i32_0 : i32, i32
  }
  func.func @transform_7(%arg0: i32) -> (i32, i32) {
    %c0_i32 = arith.constant 0 : i32
    %c0_i32_0 = arith.constant 0 : i32
    %c0_i32_1 = arith.constant 0 : i32
    return %c0_i32, %c0_i32_0 : i32, i32
  }
  func.func @transform_8(%arg0: i32) -> (i32, i32) {
    %c0_i32 = arith.constant 0 : i32
    %c0_i32_0 = arith.constant 0 : i32
    %c0_i32_1 = arith.constant 0 : i32
    return %c0_i32, %c0_i32_0 : i32, i32
  }
  func.func @transform_9(%arg0: i32) -> (i32, i32) {
    %c0_i32 = arith.constant 0 : i32
    %c0_i32_0 = arith.constant 0 : i32
    %c0_i32_1 = arith.constant 0 : i32
    return %c0_i32, %c0_i32_0 : i32, i32
  }
  func.func @transform_10(%arg0: i32) -> (i32, i32, i32, i32) {
    %c0_i32 = arith.constant 0 : i32
    %c0_i32_0 = arith.constant 0 : i32
    %c0_i32_1 = arith.constant 0 : i32
    %c0_i32_2 = arith.constant 0 : i32
    return %arg0, %c0_i32, %c0_i32_0, %c0_i32_1 : i32, i32, i32, i32
  }
}

module attributes {stable_mosaic.version = 11 : i64} {
  func.func @_mid_kernel(%arg0: i32, %arg1: memref<1x8x32xf32, #tpu.memory_space<vmem>>, %arg2: memref<1x8x32xf32, #tpu.memory_space<vmem>>, %arg3: memref<1x8x32xf32, #tpu.memory_space<vmem>>, %arg4: memref<1x1x8x8xf32, #tpu.memory_space<vmem>>, %arg5: memref<32x32xf32, #tpu.memory_space<vmem>>, %arg6: memref<1x32xf32, #tpu.memory_space<vmem>>, %arg7: memref<1x32xf32, #tpu.memory_space<vmem>>, %arg8: memref<1x32xf32, #tpu.memory_space<vmem>>, %arg9: memref<32x32xf32, #tpu.memory_space<vmem>>, %arg10: memref<1x32xf32, #tpu.memory_space<vmem>>, %arg11: memref<32x32xf32, #tpu.memory_space<vmem>>, %arg12: memref<1x32xf32, #tpu.memory_space<vmem>>, %arg13: memref<32x32xf32, #tpu.memory_space<vmem>>, %arg14: memref<1x32xf32, #tpu.memory_space<vmem>>, %arg15: memref<1x8x32xf32, #tpu.memory_space<vmem>>, %arg16: memref<1x4x8x8xf32, #tpu.memory_space<vmem>>) attributes {dimension_semantics = [#tpu.dimension_semantics<parallel>], iteration_bounds = array<i64: 2>, scalar_prefetch = 0 : i64, scratch_operands = 0 : i64, tpu.core_type = #tpu.core_type<tc>, window_params = [{transform_indices = @transform_0, window_bounds = array<i64: 1, 8, 32>}, {transform_indices = @transform_1, window_bounds = array<i64: 1, 8, 32>}, {transform_indices = @transform_2, window_bounds = array<i64: 1, 8, 32>}, {pipeline_mode = #tpu.pipeline_mode<synchronous>, transform_indices = @transform_3, window_bounds = array<i64: 1, 1, 8, 8>}, {pipeline_mode = #tpu.pipeline_mode<synchronous>, transform_indices = @transform_4, window_bounds = array<i64: 32, 32>}, {pipeline_mode = #tpu.pipeline_mode<synchronous>, transform_indices = @transform_5, window_bounds = array<i64: 1, 32>}, {pipeline_mode = #tpu.pipeline_mode<synchronous>, transform_indices = @transform_6, window_bounds = array<i64: 1, 32>}, {pipeline_mode = #tpu.pipeline_mode<synchronous>, transform_indices = @transform_7, window_bounds = array<i64: 1, 32>}, {pipeline_mode = #tpu.pipeline_mode<synchronous>, transform_indices = @transform_8, window_bounds = array<i64: 32, 32>}, {pipeline_mode = #tpu.pipeline_mode<synchronous>, transform_indices = @transform_9, window_bounds = array<i64: 1, 32>}, {pipeline_mode = #tpu.pipeline_mode<synchronous>, transform_indices = @transform_10, window_bounds = array<i64: 32, 32>}, {pipeline_mode = #tpu.pipeline_mode<synchronous>, transform_indices = @transform_11, window_bounds = array<i64: 1, 32>}, {pipeline_mode = #tpu.pipeline_mode<synchronous>, transform_indices = @transform_12, window_bounds = array<i64: 32, 32>}, {pipeline_mode = #tpu.pipeline_mode<synchronous>, transform_indices = @transform_13, window_bounds = array<i64: 1, 32>}, {transform_indices = @transform_14, window_bounds = array<i64: 1, 8, 32>}, {transform_indices = @transform_15, window_bounds = array<i64: 1, 4, 8, 8>}]} {
    %c0 = arith.constant 0 : index
    %c0_0 = arith.constant 0 : index
    %c0_1 = arith.constant 0 : index
    %0 = vector.load %arg1[%c0, %c0_0, %c0_1] : memref<1x8x32xf32, #tpu.memory_space<vmem>>, vector<1x8x32xf32>
    %1 = vector.shape_cast %0 : vector<1x8x32xf32> to vector<8x32xf32>
    %c0_2 = arith.constant 0 : index
    %c0_3 = arith.constant 0 : index
    %c0_4 = arith.constant 0 : index
    %2 = vector.load %arg2[%c0_2, %c0_3, %c0_4] : memref<1x8x32xf32, #tpu.memory_space<vmem>>, vector<1x8x32xf32>
    %3 = vector.shape_cast %2 : vector<1x8x32xf32> to vector<8x32xf32>
    %c0_5 = arith.constant 0 : index
    %c0_6 = arith.constant 0 : index
    %4 = vector.load %arg5[%c0_5, %c0_6] : memref<32x32xf32, #tpu.memory_space<vmem>>, vector<32x32xf32>
    %cst = arith.constant dense<0.000000e+00> : vector<8x32xf32>
    %5 = tpu.matmul %3, %4, %cst {dimension_numbers = #tpu.dot_dimension_numbers<[1], [0], [0], [1], [0, 0, 1, 1], [], []>} : vector<8x32xf32>, vector<32x32xf32>, vector<8x32xf32> -> vector<8x32xf32>
    %6 = arith.addf %1, %5 : vector<8x32xf32>
    %c0_7 = arith.constant 0 : index
    %c0_8 = arith.constant 0 : index
    %7 = vector.load %arg6[%c0_7, %c0_8] : memref<1x32xf32, #tpu.memory_space<vmem>>, vector<1x32xf32>
    %8 = vector.broadcast %7 : vector<1x32xf32> to vector<8x32xf32>
    %9 = arith.addf %6, %8 : vector<8x32xf32>
    %c0_9 = arith.constant 0 : index
    %c0_10 = arith.constant 0 : index
    %c0_11 = arith.constant 0 : index
    %10 = vector.load %arg15[%c0_9, %c0_10, %c0_11] : memref<1x8x32xf32, #tpu.memory_space<vmem>>, vector<1x8x32xf32>
    %11 = vector.shape_cast %10 : vector<1x8x32xf32> to vector<8x32xf32>
    %12 = vector.shape_cast %9 : vector<8x32xf32> to vector<1x8x32xf32>
    tpu.vector_store %arg15[%c0_9, %c0_10, %c0_11], %12 {strides = array<i32>} : memref<1x8x32xf32, #tpu.memory_space<vmem>>, vector<1x8x32xf32>,
    %c0_12 = arith.constant 0 : index
    %c0_13 = arith.constant 0 : index
    %13 = vector.load %arg7[%c0_12, %c0_13] : memref<1x32xf32, #tpu.memory_space<vmem>>, vector<1x32xf32>
    %c0_14 = arith.constant 0 : index
    %c0_15 = arith.constant 0 : index
    %14 = vector.load %arg8[%c0_14, %c0_15] : memref<1x32xf32, #tpu.memory_space<vmem>>, vector<1x32xf32>
    %cst_16 = arith.constant dense<0.000000e+00> : vector<8xf32>
    %15 = vector.multi_reduction <add>, %9, %cst_16 [1] : vector<8x32xf32> to vector<8xf32>
    %16 = vector.shape_cast %15 : vector<8xf32> to vector<8x1xf32>
    %cst_17 = arith.constant 3.200000e+01 : f32
    %17 = vector.broadcast %cst_17 : f32 to vector<8x1xf32>
    %18 = arith.divf %16, %17 : vector<8x1xf32>
    %19 = vector.broadcast %18 : vector<8x1xf32> to vector<8x32xf32>
    %20 = arith.subf %9, %19 : vector<8x32xf32>
    %21 = arith.mulf %20, %20 : vector<8x32xf32>
    %cst_18 = arith.constant dense<0.000000e+00> : vector<8xf32>
    %22 = vector.multi_reduction <add>, %21, %cst_18 [1] : vector<8x32xf32> to vector<8xf32>
    %23 = vector.shape_cast %22 : vector<8xf32> to vector<8x1xf32>
    %cst_19 = arith.constant 3.200000e+01 : f32
    %24 = vector.broadcast %cst_19 : f32 to vector<8x1xf32>
    %25 = arith.divf %23, %24 : vector<8x1xf32>
    %26 = vector.broadcast %18 : vector<8x1xf32> to vector<8x32xf32>
    %27 = arith.subf %9, %26 : vector<8x32xf32>
    %cst_20 = arith.constant 9.99999974E-6 : f32
    %28 = vector.broadcast %cst_20 : f32 to vector<8x1xf32>
    %29 = arith.addf %25, %28 : vector<8x1xf32>
    %30 = math.rsqrt %29 : vector<8x1xf32>
    %31 = vector.broadcast %30 : vector<8x1xf32> to vector<8x32xf32>
    %32 = arith.mulf %27, %31 : vector<8x32xf32>
    %33 = vector.broadcast %13 : vector<1x32xf32> to vector<8x32xf32>
    %34 = arith.mulf %32, %33 : vector<8x32xf32>
    %35 = vector.broadcast %14 : vector<1x32xf32> to vector<8x32xf32>
    %36 = arith.addf %34, %35 : vector<8x32xf32>
    %c0_21 = arith.constant 0 : index
    %c0_22 = arith.constant 0 : index
    %c0_23 = arith.constant 0 : index
    %37 = vector.load %arg3[%c0_21, %c0_22, %c0_23] : memref<1x8x32xf32, #tpu.memory_space<vmem>>, vector<1x8x32xf32>
    %38 = vector.shape_cast %37 : vector<1x8x32xf32> to vector<8x32xf32>
    %c0_24 = arith.constant 0 : index
    %c0_25 = arith.constant 0 : index
    %39 = vector.load %arg9[%c0_24, %c0_25] : memref<32x32xf32, #tpu.memory_space<vmem>>, vector<32x32xf32>
    %c0_26 = arith.constant 0 : index
    %c0_27 = arith.constant 0 : index
    %40 = vector.load %arg10[%c0_26, %c0_27] : memref<1x32xf32, #tpu.memory_space<vmem>>, vector<1x32xf32>
    %c0_28 = arith.constant 0 : index
    %c0_29 = arith.constant 0 : index
    %41 = vector.load %arg11[%c0_28, %c0_29] : memref<32x32xf32, #tpu.memory_space<vmem>>, vector<32x32xf32>
    %c0_30 = arith.constant 0 : index
    %c0_31 = arith.constant 0 : index
    %42 = vector.load %arg12[%c0_30, %c0_31] : memref<1x32xf32, #tpu.memory_space<vmem>>, vector<1x32xf32>
    %c0_32 = arith.constant 0 : index
    %c0_33 = arith.constant 0 : index
    %43 = vector.load %arg13[%c0_32, %c0_33] : memref<32x32xf32, #tpu.memory_space<vmem>>, vector<32x32xf32>
    %c0_34 = arith.constant 0 : index
    %c0_35 = arith.constant 0 : index
    %44 = vector.load %arg14[%c0_34, %c0_35] : memref<1x32xf32, #tpu.memory_space<vmem>>, vector<1x32xf32>
    %cst_36 = arith.constant dense<0.000000e+00> : vector<8x32xf32>
    %45 = tpu.matmul %36, %39, %cst_36 {dimension_numbers = #tpu.dot_dimension_numbers<[1], [0], [0], [1], [0, 0, 1, 1], [], []>} : vector<8x32xf32>, vector<32x32xf32>, vector<8x32xf32> -> vector<8x32xf32>
    %46 = vector.broadcast %40 : vector<1x32xf32> to vector<8x32xf32>
    %47 = arith.addf %45, %46 : vector<8x32xf32>
    %cst_37 = arith.constant dense<0.000000e+00> : vector<8x32xf32>
    %48 = tpu.matmul %38, %41, %cst_37 {dimension_numbers = #tpu.dot_dimension_numbers<[1], [0], [0], [1], [0, 0, 1, 1], [], []>} : vector<8x32xf32>, vector<32x32xf32>, vector<8x32xf32> -> vector<8x32xf32>
    %49 = vector.broadcast %42 : vector<1x32xf32> to vector<8x32xf32>
    %50 = arith.addf %48, %49 : vector<8x32xf32>
    %cst_38 = arith.constant dense<0.000000e+00> : vector<8x32xf32>
    %51 = tpu.matmul %38, %43, %cst_38 {dimension_numbers = #tpu.dot_dimension_numbers<[1], [0], [0], [1], [0, 0, 1, 1], [], []>} : vector<8x32xf32>, vector<32x32xf32>, vector<8x32xf32> -> vector<8x32xf32>
    %52 = vector.broadcast %44 : vector<1x32xf32> to vector<8x32xf32>
    %53 = arith.addf %51, %52 : vector<8x32xf32>
    %54 = vector.extract_strided_slice %47 {offsets = [0, 0], sizes = [8, 8], strides = [1, 1]} : vector<8x32xf32> to vector<8x8xf32>
    %55 = vector.extract_strided_slice %50 {offsets = [0, 0], sizes = [8, 8], strides = [1, 1]} : vector<8x32xf32> to vector<8x8xf32>
    %56 = vector.extract_strided_slice %53 {offsets = [0, 0], sizes = [8, 8], strides = [1, 1]} : vector<8x32xf32> to vector<8x8xf32>
    %cst_39 = arith.constant dense<0.000000e+00> : vector<8x8xf32>
    %57 = tpu.matmul %54, %55, %cst_39 {dimension_numbers = #tpu.dot_dimension_numbers<[1], [1], [0], [0], [0, 0, 1, 0], [], []>} : vector<8x8xf32>, vector<8x8xf32>, vector<8x8xf32> -> vector<8x8xf32>
    %cst_40 = arith.constant 0.353553385 : f32
    %58 = vector.broadcast %cst_40 : f32 to vector<8x8xf32>
    %59 = arith.mulf %57, %58 : vector<8x8xf32>
    %c0_41 = arith.constant 0 : index
    %c0_42 = arith.constant 0 : index
    %c0_43 = arith.constant 0 : index
    %c0_44 = arith.constant 0 : index
    %60 = vector.load %arg4[%c0_41, %c0_42, %c0_43, %c0_44] : memref<1x1x8x8xf32, #tpu.memory_space<vmem>>, vector<1x1x8x8xf32>
    %61 = vector.shape_cast %60 : vector<1x1x8x8xf32> to vector<8x8xf32>
    %62 = arith.addf %59, %61 : vector<8x8xf32>
    %cst_45 = arith.constant dense<0xFF800000> : vector<8xf32>
    %63 = vector.multi_reduction <maximumf>, %62, %cst_45 [1] : vector<8x8xf32> to vector<8xf32>
    %64 = vector.shape_cast %63 : vector<8xf32> to vector<8x1xf32>
    %65 = vector.broadcast %64 : vector<8x1xf32> to vector<8x8xf32>
    %66 = arith.subf %62, %65 : vector<8x8xf32>
    %67 = math.exp %66 : vector<8x8xf32>
    %cst_46 = arith.constant dense<0.000000e+00> : vector<8xf32>
    %68 = vector.multi_reduction <add>, %67, %cst_46 [1] : vector<8x8xf32> to vector<8xf32>
    %69 = vector.shape_cast %68 : vector<8xf32> to vector<8x1xf32>
    %70 = vector.broadcast %69 : vector<8x1xf32> to vector<8x8xf32>
    %71 = arith.divf %67, %70 : vector<8x8xf32>
    %cst_47 = arith.constant dense<0.000000e+00> : vector<8x8xf32>
    %72 = tpu.matmul %71, %56, %cst_47 {dimension_numbers = #tpu.dot_dimension_numbers<[1], [0], [0], [1], [0, 0, 1, 1], [], []>} : vector<8x8xf32>, vector<8x8xf32>, vector<8x8xf32> -> vector<8x8xf32>
    %c0_48 = arith.constant 0 : index
    %c0_49 = arith.constant 0 : index
    %c0_50 = arith.constant 0 : index
    %c0_51 = arith.constant 0 : index
    %73 = vector.load %arg16[%c0_48, %c0_49, %c0_50, %c0_51] : memref<1x4x8x8xf32, #tpu.memory_space<vmem>>, vector<1x1x8x8xf32>
    %74 = vector.shape_cast %73 : vector<1x1x8x8xf32> to vector<8x8xf32>
    %75 = vector.shape_cast %72 : vector<8x8xf32> to vector<1x1x8x8xf32>
    tpu.vector_store %arg16[%c0_48, %c0_49, %c0_50, %c0_51], %75 {strides = array<i32>} : memref<1x4x8x8xf32, #tpu.memory_space<vmem>>, vector<1x1x8x8xf32>,
    %76 = vector.extract_strided_slice %47 {offsets = [0, 8], sizes = [8, 8], strides = [1, 1]} : vector<8x32xf32> to vector<8x8xf32>
    %77 = vector.extract_strided_slice %50 {offsets = [0, 8], sizes = [8, 8], strides = [1, 1]} : vector<8x32xf32> to vector<8x8xf32>
    %78 = vector.extract_strided_slice %53 {offsets = [0, 8], sizes = [8, 8], strides = [1, 1]} : vector<8x32xf32> to vector<8x8xf32>
    %cst_52 = arith.constant dense<0.000000e+00> : vector<8x8xf32>
    %79 = tpu.matmul %76, %77, %cst_52 {dimension_numbers = #tpu.dot_dimension_numbers<[1], [1], [0], [0], [0, 0, 1, 0], [], []>} : vector<8x8xf32>, vector<8x8xf32>, vector<8x8xf32> -> vector<8x8xf32>
    %cst_53 = arith.constant 0.353553385 : f32
    %80 = vector.broadcast %cst_53 : f32 to vector<8x8xf32>
    %81 = arith.mulf %79, %80 : vector<8x8xf32>
    %c0_54 = arith.constant 0 : index
    %c0_55 = arith.constant 0 : index
    %c0_56 = arith.constant 0 : index
    %c0_57 = arith.constant 0 : index
    %82 = vector.load %arg4[%c0_54, %c0_55, %c0_56, %c0_57] : memref<1x1x8x8xf32, #tpu.memory_space<vmem>>, vector<1x1x8x8xf32>
    %83 = vector.shape_cast %82 : vector<1x1x8x8xf32> to vector<8x8xf32>
    %84 = arith.addf %81, %83 : vector<8x8xf32>
    %cst_58 = arith.constant dense<0xFF800000> : vector<8xf32>
    %85 = vector.multi_reduction <maximumf>, %84, %cst_58 [1] : vector<8x8xf32> to vector<8xf32>
    %86 = vector.shape_cast %85 : vector<8xf32> to vector<8x1xf32>
    %87 = vector.broadcast %86 : vector<8x1xf32> to vector<8x8xf32>
    %88 = arith.subf %84, %87 : vector<8x8xf32>
    %89 = math.exp %88 : vector<8x8xf32>
    %cst_59 = arith.constant dense<0.000000e+00> : vector<8xf32>
    %90 = vector.multi_reduction <add>, %89, %cst_59 [1] : vector<8x8xf32> to vector<8xf32>
    %91 = vector.shape_cast %90 : vector<8xf32> to vector<8x1xf32>
    %92 = vector.broadcast %91 : vector<8x1xf32> to vector<8x8xf32>
    %93 = arith.divf %89, %92 : vector<8x8xf32>
    %cst_60 = arith.constant dense<0.000000e+00> : vector<8x8xf32>
    %94 = tpu.matmul %93, %78, %cst_60 {dimension_numbers = #tpu.dot_dimension_numbers<[1], [0], [0], [1], [0, 0, 1, 1], [], []>} : vector<8x8xf32>, vector<8x8xf32>, vector<8x8xf32> -> vector<8x8xf32>
    %c0_61 = arith.constant 0 : index
    %c1 = arith.constant 1 : index
    %c0_62 = arith.constant 0 : index
    %c0_63 = arith.constant 0 : index
    %95 = vector.load %arg16[%c0_61, %c1, %c0_62, %c0_63] : memref<1x4x8x8xf32, #tpu.memory_space<vmem>>, vector<1x1x8x8xf32>
    %96 = vector.shape_cast %95 : vector<1x1x8x8xf32> to vector<8x8xf32>
    %97 = vector.shape_cast %94 : vector<8x8xf32> to vector<1x1x8x8xf32>
    tpu.vector_store %arg16[%c0_61, %c1, %c0_62, %c0_63], %97 {strides = array<i32>} : memref<1x4x8x8xf32, #tpu.memory_space<vmem>>, vector<1x1x8x8xf32>,
    %98 = vector.extract_strided_slice %47 {offsets = [0, 16], sizes = [8, 8], strides = [1, 1]} : vector<8x32xf32> to vector<8x8xf32>
    %99 = vector.extract_strided_slice %50 {offsets = [0, 16], sizes = [8, 8], strides = [1, 1]} : vector<8x32xf32> to vector<8x8xf32>
    %100 = vector.extract_strided_slice %53 {offsets = [0, 16], sizes = [8, 8], strides = [1, 1]} : vector<8x32xf32> to vector<8x8xf32>
    %cst_64 = arith.constant dense<0.000000e+00> : vector<8x8xf32>
    %101 = tpu.matmul %98, %99, %cst_64 {dimension_numbers = #tpu.dot_dimension_numbers<[1], [1], [0], [0], [0, 0, 1, 0], [], []>} : vector<8x8xf32>, vector<8x8xf32>, vector<8x8xf32> -> vector<8x8xf32>
    %cst_65 = arith.constant 0.353553385 : f32
    %102 = vector.broadcast %cst_65 : f32 to vector<8x8xf32>
    %103 = arith.mulf %101, %102 : vector<8x8xf32>
    %c0_66 = arith.constant 0 : index
    %c0_67 = arith.constant 0 : index
    %c0_68 = arith.constant 0 : index
    %c0_69 = arith.constant 0 : index
    %104 = vector.load %arg4[%c0_66, %c0_67, %c0_68, %c0_69] : memref<1x1x8x8xf32, #tpu.memory_space<vmem>>, vector<1x1x8x8xf32>
    %105 = vector.shape_cast %104 : vector<1x1x8x8xf32> to vector<8x8xf32>
    %106 = arith.addf %103, %105 : vector<8x8xf32>
    %cst_70 = arith.constant dense<0xFF800000> : vector<8xf32>
    %107 = vector.multi_reduction <maximumf>, %106, %cst_70 [1] : vector<8x8xf32> to vector<8xf32>
    %108 = vector.shape_cast %107 : vector<8xf32> to vector<8x1xf32>
    %109 = vector.broadcast %108 : vector<8x1xf32> to vector<8x8xf32>
    %110 = arith.subf %106, %109 : vector<8x8xf32>
    %111 = math.exp %110 : vector<8x8xf32>
    %cst_71 = arith.constant dense<0.000000e+00> : vector<8xf32>
    %112 = vector.multi_reduction <add>, %111, %cst_71 [1] : vector<8x8xf32> to vector<8xf32>
    %113 = vector.shape_cast %112 : vector<8xf32> to vector<8x1xf32>
    %114 = vector.broadcast %113 : vector<8x1xf32> to vector<8x8xf32>
    %115 = arith.divf %111, %114 : vector<8x8xf32>
    %cst_72 = arith.constant dense<0.000000e+00> : vector<8x8xf32>
    %116 = tpu.matmul %115, %100, %cst_72 {dimension_numbers = #tpu.dot_dimension_numbers<[1], [0], [0], [1], [0, 0, 1, 1], [], []>} : vector<8x8xf32>, vector<8x8xf32>, vector<8x8xf32> -> vector<8x8xf32>
    %c0_73 = arith.constant 0 : index
    %c2 = arith.constant 2 : index
    %c0_74 = arith.constant 0 : index
    %c0_75 = arith.constant 0 : index
    %117 = vector.load %arg16[%c0_73, %c2, %c0_74, %c0_75] : memref<1x4x8x8xf32, #tpu.memory_space<vmem>>, vector<1x1x8x8xf32>
    %118 = vector.shape_cast %117 : vector<1x1x8x8xf32> to vector<8x8xf32>
    %119 = vector.shape_cast %116 : vector<8x8xf32> to vector<1x1x8x8xf32>
    tpu.vector_store %arg16[%c0_73, %c2, %c0_74, %c0_75], %119 {strides = array<i32>} : memref<1x4x8x8xf32, #tpu.memory_space<vmem>>, vector<1x1x8x8xf32>,
    %120 = vector.extract_strided_slice %47 {offsets = [0, 24], sizes = [8, 8], strides = [1, 1]} : vector<8x32xf32> to vector<8x8xf32>
    %121 = vector.extract_strided_slice %50 {offsets = [0, 24], sizes = [8, 8], strides = [1, 1]} : vector<8x32xf32> to vector<8x8xf32>
    %122 = vector.extract_strided_slice %53 {offsets = [0, 24], sizes = [8, 8], strides = [1, 1]} : vector<8x32xf32> to vector<8x8xf32>
    %cst_76 = arith.constant dense<0.000000e+00> : vector<8x8xf32>
    %123 = tpu.matmul %120, %121, %cst_76 {dimension_numbers = #tpu.dot_dimension_numbers<[1], [1], [0], [0], [0, 0, 1, 0], [], []>} : vector<8x8xf32>, vector<8x8xf32>, vector<8x8xf32> -> vector<8x8xf32>
    %cst_77 = arith.constant 0.353553385 : f32
    %124 = vector.broadcast %cst_77 : f32 to vector<8x8xf32>
    %125 = arith.mulf %123, %124 : vector<8x8xf32>
    %c0_78 = arith.constant 0 : index
    %c0_79 = arith.constant 0 : index
    %c0_80 = arith.constant 0 : index
    %c0_81 = arith.constant 0 : index
    %126 = vector.load %arg4[%c0_78, %c0_79, %c0_80, %c0_81] : memref<1x1x8x8xf32, #tpu.memory_space<vmem>>, vector<1x1x8x8xf32>
    %127 = vector.shape_cast %126 : vector<1x1x8x8xf32> to vector<8x8xf32>
    %128 = arith.addf %125, %127 : vector<8x8xf32>
    %cst_82 = arith.constant dense<0xFF800000> : vector<8xf32>
    %129 = vector.multi_reduction <maximumf>, %128, %cst_82 [1] : vector<8x8xf32> to vector<8xf32>
    %130 = vector.shape_cast %129 : vector<8xf32> to vector<8x1xf32>
    %131 = vector.broadcast %130 : vector<8x1xf32> to vector<8x8xf32>
    %132 = arith.subf %128, %131 : vector<8x8xf32>
    %133 = math.exp %132 : vector<8x8xf32>
    %cst_83 = arith.constant dense<0.000000e+00> : vector<8xf32>
    %134 = vector.multi_reduction <add>, %133, %cst_83 [1] : vector<8x8xf32> to vector<8xf32>
    %135 = vector.shape_cast %134 : vector<8xf32> to vector<8x1xf32>
    %136 = vector.broadcast %135 : vector<8x1xf32> to vector<8x8xf32>
    %137 = arith.divf %133, %136 : vector<8x8xf32>
    %cst_84 = arith.constant dense<0.000000e+00> : vector<8x8xf32>
    %138 = tpu.matmul %137, %122, %cst_84 {dimension_numbers = #tpu.dot_dimension_numbers<[1], [0], [0], [1], [0, 0, 1, 1], [], []>} : vector<8x8xf32>, vector<8x8xf32>, vector<8x8xf32> -> vector<8x8xf32>
    %c0_85 = arith.constant 0 : index
    %c3 = arith.constant 3 : index
    %c0_86 = arith.constant 0 : index
    %c0_87 = arith.constant 0 : index
    %139 = vector.load %arg16[%c0_85, %c3, %c0_86, %c0_87] : memref<1x4x8x8xf32, #tpu.memory_space<vmem>>, vector<1x1x8x8xf32>
    %140 = vector.shape_cast %139 : vector<1x1x8x8xf32> to vector<8x8xf32>
    %141 = vector.shape_cast %138 : vector<8x8xf32> to vector<1x1x8x8xf32>
    tpu.vector_store %arg16[%c0_85, %c3, %c0_86, %c0_87], %141 {strides = array<i32>} : memref<1x4x8x8xf32, #tpu.memory_space<vmem>>, vector<1x1x8x8xf32>,
    return
  }
  func.func @transform_0(%arg0: i32) -> (i32, i32, i32) {
    %c0_i32 = arith.constant 0 : i32
    %c0_i32_0 = arith.constant 0 : i32
    %c0_i32_1 = arith.constant 0 : i32
    return %arg0, %c0_i32, %c0_i32_0 : i32, i32, i32
  }
  func.func @transform_1(%arg0: i32) -> (i32, i32, i32) {
    %c0_i32 = arith.constant 0 : i32
    %c0_i32_0 = arith.constant 0 : i32
    %c0_i32_1 = arith.constant 0 : i32
    return %arg0, %c0_i32, %c0_i32_0 : i32, i32, i32
  }
  func.func @transform_2(%arg0: i32) -> (i32, i32, i32) {
    %c0_i32 = arith.constant 0 : i32
    %c0_i32_0 = arith.constant 0 : i32
    %c0_i32_1 = arith.constant 0 : i32
    return %arg0, %c0_i32, %c0_i32_0 : i32, i32, i32
  }
  func.func @transform_3(%arg0: i32) -> (i32, i32, i32, i32) {
    %c0_i32 = arith.constant 0 : i32
    %c0_i32_0 = arith.constant 0 : i32
    %c0_i32_1 = arith.constant 0 : i32
    %c0_i32_2 = arith.constant 0 : i32
    %c0_i32_3 = arith.constant 0 : i32
    return %c0_i32, %c0_i32_0, %c0_i32_1, %c0_i32_2 : i32, i32, i32, i32
  }
  func.func @transform_4(%arg0: i32) -> (i32, i32) {
    %c0_i32 = arith.constant 0 : i32
    %c0_i32_0 = arith.constant 0 : i32
    %c0_i32_1 = arith.constant 0 : i32
    return %c0_i32, %c0_i32_0 : i32, i32
  }
  func.func @transform_5(%arg0: i32) -> (i32, i32) {
    %c0_i32 = arith.constant 0 : i32
    %c0_i32_0 = arith.constant 0 : i32
    %c0_i32_1 = arith.constant 0 : i32
    return %c0_i32, %c0_i32_0 : i32, i32
  }
  func.func @transform_6(%arg0: i32) -> (i32, i32) {
    %c0_i32 = arith.constant 0 : i32
    %c0_i32_0 = arith.constant 0 : i32
    %c0_i32_1 = arith.constant 0 : i32
    return %c0_i32, %c0_i32_0 : i32, i32
  }
  func.func @transform_7(%arg0: i32) -> (i32, i32) {
    %c0_i32 = arith.constant 0 : i32
    %c0_i32_0 = arith.constant 0 : i32
    %c0_i32_1 = arith.constant 0 : i32
    return %c0_i32, %c0_i32_0 : i32, i32
  }
  func.func @transform_8(%arg0: i32) -> (i32, i32) {
    %c0_i32 = arith.constant 0 : i32
    %c0_i32_0 = arith.constant 0 : i32
    %c0_i32_1 = arith.constant 0 : i32
    return %c0_i32, %c0_i32_0 : i32, i32
  }
  func.func @transform_9(%arg0: i32) -> (i32, i32) {
    %c0_i32 = arith.constant 0 : i32
    %c0_i32_0 = arith.constant 0 : i32
    %c0_i32_1 = arith.constant 0 : i32
    return %c0_i32, %c0_i32_0 : i32, i32
  }
  func.func @transform_10(%arg0: i32) -> (i32, i32) {
    %c0_i32 = arith.constant 0 : i32
    %c0_i32_0 = arith.constant 0 : i32
    %c0_i32_1 = arith.constant 0 : i32
    return %c0_i32, %c0_i32_0 : i32, i32
  }
  func.func @transform_11(%arg0: i32) -> (i32, i32) {
    %c0_i32 = arith.constant 0 : i32
    %c0_i32_0 = arith.constant 0 : i32
    %c0_i32_1 = arith.constant 0 : i32
    return %c0_i32, %c0_i32_0 : i32, i32
  }
  func.func @transform_12(%arg0: i32) -> (i32, i32) {
    %c0_i32 = arith.constant 0 : i32
    %c0_i32_0 = arith.constant 0 : i32
    %c0_i32_1 = arith.constant 0 : i32
    return %c0_i32, %c0_i32_0 : i32, i32
  }
  func.func @transform_13(%arg0: i32) -> (i32, i32) {
    %c0_i32 = arith.constant 0 : i32
    %c0_i32_0 = arith.constant 0 : i32
    %c0_i32_1 = arith.constant 0 : i32
    return %c0_i32, %c0_i32_0 : i32, i32
  }
  func.func @transform_14(%arg0: i32) -> (i32, i32, i32) {
    %c0_i32 = arith.constant 0 : i32
    %c0_i32_0 = arith.constant 0 : i32
    %c0_i32_1 = arith.constant 0 : i32
    return %arg0, %c0_i32, %c0_i32_0 : i32, i32, i32
  }
  func.func @transform_15(%arg0: i32) -> (i32, i32, i32, i32) {
    %c0_i32 = arith.constant 0 : i32
    %c0_i32_0 = arith.constant 0 : i32
    %c0_i32_1 = arith.constant 0 : i32
    %c0_i32_2 = arith.constant 0 : i32
    return %arg0, %c0_i32, %c0_i32_0, %c0_i32_1 : i32, i32, i32, i32
  }
}

module attributes {stable_mosaic.version = 11 : i64} {
  func.func @_tail_kernel(%arg0: i32, %arg1: memref<1x8x32xf32, #tpu.memory_space<vmem>>, %arg2: memref<1x8x32xf32, #tpu.memory_space<vmem>>, %arg3: memref<32x32xf32, #tpu.memory_space<vmem>>, %arg4: memref<1x32xf32, #tpu.memory_space<vmem>>, %arg5: memref<1x32xf32, #tpu.memory_space<vmem>>, %arg6: memref<1x32xf32, #tpu.memory_space<vmem>>, %arg7: memref<32x64xf32, #tpu.memory_space<vmem>>, %arg8: memref<1x64xf32, #tpu.memory_space<vmem>>, %arg9: memref<64x32xf32, #tpu.memory_space<vmem>>, %arg10: memref<1x32xf32, #tpu.memory_space<vmem>>, %arg11: memref<1x8x32xf32, #tpu.memory_space<vmem>>) attributes {dimension_semantics = [#tpu.dimension_semantics<parallel>], iteration_bounds = array<i64: 2>, scalar_prefetch = 0 : i64, scratch_operands = 0 : i64, tpu.core_type = #tpu.core_type<tc>, window_params = [{transform_indices = @transform_0, window_bounds = array<i64: 1, 8, 32>}, {transform_indices = @transform_1, window_bounds = array<i64: 1, 8, 32>}, {pipeline_mode = #tpu.pipeline_mode<synchronous>, transform_indices = @transform_2, window_bounds = array<i64: 32, 32>}, {pipeline_mode = #tpu.pipeline_mode<synchronous>, transform_indices = @transform_3, window_bounds = array<i64: 1, 32>}, {pipeline_mode = #tpu.pipeline_mode<synchronous>, transform_indices = @transform_4, window_bounds = array<i64: 1, 32>}, {pipeline_mode = #tpu.pipeline_mode<synchronous>, transform_indices = @transform_5, window_bounds = array<i64: 1, 32>}, {pipeline_mode = #tpu.pipeline_mode<synchronous>, transform_indices = @transform_6, window_bounds = array<i64: 32, 64>}, {pipeline_mode = #tpu.pipeline_mode<synchronous>, transform_indices = @transform_7, window_bounds = array<i64: 1, 64>}, {pipeline_mode = #tpu.pipeline_mode<synchronous>, transform_indices = @transform_8, window_bounds = array<i64: 64, 32>}, {pipeline_mode = #tpu.pipeline_mode<synchronous>, transform_indices = @transform_9, window_bounds = array<i64: 1, 32>}, {transform_indices = @transform_10, window_bounds = array<i64: 1, 8, 32>}]} {
    %c0 = arith.constant 0 : index
    %c0_0 = arith.constant 0 : index
    %c0_1 = arith.constant 0 : index
    %0 = vector.load %arg1[%c0, %c0_0, %c0_1] : memref<1x8x32xf32, #tpu.memory_space<vmem>>, vector<1x8x32xf32>
    %1 = vector.shape_cast %0 : vector<1x8x32xf32> to vector<8x32xf32>
    %c0_2 = arith.constant 0 : index
    %c0_3 = arith.constant 0 : index
    %c0_4 = arith.constant 0 : index
    %2 = vector.load %arg2[%c0_2, %c0_3, %c0_4] : memref<1x8x32xf32, #tpu.memory_space<vmem>>, vector<1x8x32xf32>
    %3 = vector.shape_cast %2 : vector<1x8x32xf32> to vector<8x32xf32>
    %c0_5 = arith.constant 0 : index
    %c0_6 = arith.constant 0 : index
    %4 = vector.load %arg3[%c0_5, %c0_6] : memref<32x32xf32, #tpu.memory_space<vmem>>, vector<32x32xf32>
    %cst = arith.constant dense<0.000000e+00> : vector<8x32xf32>
    %5 = tpu.matmul %3, %4, %cst {dimension_numbers = #tpu.dot_dimension_numbers<[1], [0], [0], [1], [0, 0, 1, 1], [], []>} : vector<8x32xf32>, vector<32x32xf32>, vector<8x32xf32> -> vector<8x32xf32>
    %6 = arith.addf %1, %5 : vector<8x32xf32>
    %c0_7 = arith.constant 0 : index
    %c0_8 = arith.constant 0 : index
    %7 = vector.load %arg4[%c0_7, %c0_8] : memref<1x32xf32, #tpu.memory_space<vmem>>, vector<1x32xf32>
    %8 = vector.broadcast %7 : vector<1x32xf32> to vector<8x32xf32>
    %9 = arith.addf %6, %8 : vector<8x32xf32>
    %c0_9 = arith.constant 0 : index
    %c0_10 = arith.constant 0 : index
    %10 = vector.load %arg5[%c0_9, %c0_10] : memref<1x32xf32, #tpu.memory_space<vmem>>, vector<1x32xf32>
    %c0_11 = arith.constant 0 : index
    %c0_12 = arith.constant 0 : index
    %11 = vector.load %arg6[%c0_11, %c0_12] : memref<1x32xf32, #tpu.memory_space<vmem>>, vector<1x32xf32>
    %cst_13 = arith.constant dense<0.000000e+00> : vector<8xf32>
    %12 = vector.multi_reduction <add>, %9, %cst_13 [1] : vector<8x32xf32> to vector<8xf32>
    %13 = vector.shape_cast %12 : vector<8xf32> to vector<8x1xf32>
    %cst_14 = arith.constant 3.200000e+01 : f32
    %14 = vector.broadcast %cst_14 : f32 to vector<8x1xf32>
    %15 = arith.divf %13, %14 : vector<8x1xf32>
    %16 = vector.broadcast %15 : vector<8x1xf32> to vector<8x32xf32>
    %17 = arith.subf %9, %16 : vector<8x32xf32>
    %18 = arith.mulf %17, %17 : vector<8x32xf32>
    %cst_15 = arith.constant dense<0.000000e+00> : vector<8xf32>
    %19 = vector.multi_reduction <add>, %18, %cst_15 [1] : vector<8x32xf32> to vector<8xf32>
    %20 = vector.shape_cast %19 : vector<8xf32> to vector<8x1xf32>
    %cst_16 = arith.constant 3.200000e+01 : f32
    %21 = vector.broadcast %cst_16 : f32 to vector<8x1xf32>
    %22 = arith.divf %20, %21 : vector<8x1xf32>
    %23 = vector.broadcast %15 : vector<8x1xf32> to vector<8x32xf32>
    %24 = arith.subf %9, %23 : vector<8x32xf32>
    %cst_17 = arith.constant 9.99999974E-6 : f32
    %25 = vector.broadcast %cst_17 : f32 to vector<8x1xf32>
    %26 = arith.addf %22, %25 : vector<8x1xf32>
    %27 = math.rsqrt %26 : vector<8x1xf32>
    %28 = vector.broadcast %27 : vector<8x1xf32> to vector<8x32xf32>
    %29 = arith.mulf %24, %28 : vector<8x32xf32>
    %30 = vector.broadcast %10 : vector<1x32xf32> to vector<8x32xf32>
    %31 = arith.mulf %29, %30 : vector<8x32xf32>
    %32 = vector.broadcast %11 : vector<1x32xf32> to vector<8x32xf32>
    %33 = arith.addf %31, %32 : vector<8x32xf32>
    %c0_18 = arith.constant 0 : index
    %c0_19 = arith.constant 0 : index
    %34 = vector.load %arg7[%c0_18, %c0_19] : memref<32x64xf32, #tpu.memory_space<vmem>>, vector<32x64xf32>
    %cst_20 = arith.constant dense<0.000000e+00> : vector<8x64xf32>
    %35 = tpu.matmul %33, %34, %cst_20 {dimension_numbers = #tpu.dot_dimension_numbers<[1], [0], [0], [1], [0, 0, 1, 1], [], []>} : vector<8x32xf32>, vector<32x64xf32>, vector<8x64xf32> -> vector<8x64xf32>
    %c0_21 = arith.constant 0 : index
    %c0_22 = arith.constant 0 : index
    %36 = vector.load %arg8[%c0_21, %c0_22] : memref<1x64xf32, #tpu.memory_space<vmem>>, vector<1x64xf32>
    %37 = vector.broadcast %36 : vector<1x64xf32> to vector<8x64xf32>
    %38 = arith.addf %35, %37 : vector<8x64xf32>
    %cst_23 = arith.constant 0.000000e+00 : f32
    %39 = vector.broadcast %cst_23 : f32 to vector<8x64xf32>
    %40 = arith.maximumf %38, %39 : vector<8x64xf32>
    %c0_24 = arith.constant 0 : index
    %c0_25 = arith.constant 0 : index
    %41 = vector.load %arg9[%c0_24, %c0_25] : memref<64x32xf32, #tpu.memory_space<vmem>>, vector<64x32xf32>
    %cst_26 = arith.constant dense<0.000000e+00> : vector<8x32xf32>
    %42 = tpu.matmul %40, %41, %cst_26 {dimension_numbers = #tpu.dot_dimension_numbers<[1], [0], [0], [1], [0, 0, 1, 1], [], []>} : vector<8x64xf32>, vector<64x32xf32>, vector<8x32xf32> -> vector<8x32xf32>
    %43 = arith.addf %9, %42 : vector<8x32xf32>
    %c0_27 = arith.constant 0 : index
    %c0_28 = arith.constant 0 : index
    %44 = vector.load %arg10[%c0_27, %c0_28] : memref<1x32xf32, #tpu.memory_space<vmem>>, vector<1x32xf32>
    %45 = vector.broadcast %44 : vector<1x32xf32> to vector<8x32xf32>
    %46 = arith.addf %43, %45 : vector<8x32xf32>
    %c0_29 = arith.constant 0 : index
    %c0_30 = arith.constant 0 : index
    %c0_31 = arith.constant 0 : index
    %47 = vector.load %arg11[%c0_29, %c0_30, %c0_31] : memref<1x8x32xf32, #tpu.memory_space<vmem>>, vector<1x8x32xf32>
    %48 = vector.shape_cast %47 : vector<1x8x32xf32> to vector<8x32xf32>
    %49 = vector.shape_cast %46 : vector<8x32xf32> to vector<1x8x32xf32>
    tpu.vector_store %arg11[%c0_29, %c0_30, %c0_31], %49 {strides = array<i32>} : memref<1x8x32xf32, #tpu.memory_space<vmem>>, vector<1x8x32xf32>,
    return
  }
  func.func @transform_0(%arg0: i32) -> (i32, i32, i32) {
    %c0_i32 = arith.constant 0 : i32
    %c0_i32_0 = arith.constant 0 : i32
    %c0_i32_1 = arith.constant 0 : i32
    return %arg0, %c0_i32, %c0_i32_0 : i32, i32, i32
  }
  func.func @transform_1(%arg0: i32) -> (i32, i32, i32) {
    %c0_i32 = arith.constant 0 : i32
    %c0_i32_0 = arith.constant 0 : i32
    %c0_i32_1 = arith.constant 0 : i32
    return %arg0, %c0_i32, %c0_i32_0 : i32, i32, i32
  }
  func.func @transform_2(%arg0: i32) -> (i32, i32) {
    %c0_i32 = arith.constant 0 : i32
    %c0_i32_0 = arith.constant 0 : i32
    %c0_i32_1 = arith.constant 0 : i32
    return %c0_i32, %c0_i32_0 : i32, i32
  }
  func.func @transform_3(%arg0: i32) -> (i32, i32) {
    %c0_i32 = arith.constant 0 : i32
    %c0_i32_0 = arith.constant 0 : i32
    %c0_i32_1 = arith.constant 0 : i32
    return %c0_i32, %c0_i32_0 : i32, i32
  }
  func.func @transform_4(%arg0: i32) -> (i32, i32) {
    %c0_i32 = arith.constant 0 : i32
    %c0_i32_0 = arith.constant 0 : i32
    %c0_i32_1 = arith.constant 0 : i32
    return %c0_i32, %c0_i32_0 : i32, i32
  }
  func.func @transform_5(%arg0: i32) -> (i32, i32) {
    %c0_i32 = arith.constant 0 : i32
    %c0_i32_0 = arith.constant 0 : i32
    %c0_i32_1 = arith.constant 0 : i32
    return %c0_i32, %c0_i32_0 : i32, i32
  }
  func.func @transform_6(%arg0: i32) -> (i32, i32) {
    %c0_i32 = arith.constant 0 : i32
    %c0_i32_0 = arith.constant 0 : i32
    %c0_i32_1 = arith.constant 0 : i32
    return %c0_i32, %c0_i32_0 : i32, i32
  }
  func.func @transform_7(%arg0: i32) -> (i32, i32) {
    %c0_i32 = arith.constant 0 : i32
    %c0_i32_0 = arith.constant 0 : i32
    %c0_i32_1 = arith.constant 0 : i32
    return %c0_i32, %c0_i32_0 : i32, i32
  }
  func.func @transform_8(%arg0: i32) -> (i32, i32) {
    %c0_i32 = arith.constant 0 : i32
    %c0_i32_0 = arith.constant 0 : i32
    %c0_i32_1 = arith.constant 0 : i32
    return %c0_i32, %c0_i32_0 : i32, i32
  }
  func.func @transform_9(%arg0: i32) -> (i32, i32) {
    %c0_i32 = arith.constant 0 : i32
    %c0_i32_0 = arith.constant 0 : i32
    %c0_i32_1 = arith.constant 0 : i32
    return %c0_i32, %c0_i32_0 : i32, i32
  }
  func.func @transform_10(%arg0: i32) -> (i32, i32, i32) {
    %c0_i32 = arith.constant 0 : i32
    %c0_i32_0 = arith.constant 0 : i32
    %c0_i32_1 = arith.constant 0 : i32
    return %arg0, %c0_i32, %c0_i32_0 : i32, i32, i32
  }
}

module attributes {stable_mosaic.version = 11 : i64} {
  func.func @_tail_kernel(%arg0: i32, %arg1: memref<1x8x32xf32, #tpu.memory_space<vmem>>, %arg2: memref<1x8x32xf32, #tpu.memory_space<vmem>>, %arg3: memref<32x32xf32, #tpu.memory_space<vmem>>, %arg4: memref<1x32xf32, #tpu.memory_space<vmem>>, %arg5: memref<1x32xf32, #tpu.memory_space<vmem>>, %arg6: memref<1x32xf32, #tpu.memory_space<vmem>>, %arg7: memref<32x64xf32, #tpu.memory_space<vmem>>, %arg8: memref<1x64xf32, #tpu.memory_space<vmem>>, %arg9: memref<64x32xf32, #tpu.memory_space<vmem>>, %arg10: memref<1x32xf32, #tpu.memory_space<vmem>>, %arg11: memref<1x8x32xf32, #tpu.memory_space<vmem>>) attributes {dimension_semantics = [#tpu.dimension_semantics<parallel>], iteration_bounds = array<i64: 2>, scalar_prefetch = 0 : i64, scratch_operands = 0 : i64, tpu.core_type = #tpu.core_type<tc>, window_params = [{transform_indices = @transform_0, window_bounds = array<i64: 1, 8, 32>}, {transform_indices = @transform_1, window_bounds = array<i64: 1, 8, 32>}, {pipeline_mode = #tpu.pipeline_mode<synchronous>, transform_indices = @transform_2, window_bounds = array<i64: 32, 32>}, {pipeline_mode = #tpu.pipeline_mode<synchronous>, transform_indices = @transform_3, window_bounds = array<i64: 1, 32>}, {pipeline_mode = #tpu.pipeline_mode<synchronous>, transform_indices = @transform_4, window_bounds = array<i64: 1, 32>}, {pipeline_mode = #tpu.pipeline_mode<synchronous>, transform_indices = @transform_5, window_bounds = array<i64: 1, 32>}, {pipeline_mode = #tpu.pipeline_mode<synchronous>, transform_indices = @transform_6, window_bounds = array<i64: 32, 64>}, {pipeline_mode = #tpu.pipeline_mode<synchronous>, transform_indices = @transform_7, window_bounds = array<i64: 1, 64>}, {pipeline_mode = #tpu.pipeline_mode<synchronous>, transform_indices = @transform_8, window_bounds = array<i64: 64, 32>}, {pipeline_mode = #tpu.pipeline_mode<synchronous>, transform_indices = @transform_9, window_bounds = array<i64: 1, 32>}, {transform_indices = @transform_10, window_bounds = array<i64: 1, 8, 32>}]} {
    %c0 = arith.constant 0 : index
    %c0_0 = arith.constant 0 : index
    %c0_1 = arith.constant 0 : index
    %0 = vector.load %arg1[%c0, %c0_0, %c0_1] : memref<1x8x32xf32, #tpu.memory_space<vmem>>, vector<1x8x32xf32>
    %1 = vector.shape_cast %0 : vector<1x8x32xf32> to vector<8x32xf32>
    %c0_2 = arith.constant 0 : index
    %c0_3 = arith.constant 0 : index
    %c0_4 = arith.constant 0 : index
    %2 = vector.load %arg2[%c0_2, %c0_3, %c0_4] : memref<1x8x32xf32, #tpu.memory_space<vmem>>, vector<1x8x32xf32>
    %3 = vector.shape_cast %2 : vector<1x8x32xf32> to vector<8x32xf32>
    %c0_5 = arith.constant 0 : index
    %c0_6 = arith.constant 0 : index
    %4 = vector.load %arg3[%c0_5, %c0_6] : memref<32x32xf32, #tpu.memory_space<vmem>>, vector<32x32xf32>
    %cst = arith.constant dense<0.000000e+00> : vector<8x32xf32>
    %5 = tpu.matmul %3, %4, %cst {dimension_numbers = #tpu.dot_dimension_numbers<[1], [0], [0], [1], [0, 0, 1, 1], [], []>} : vector<8x32xf32>, vector<32x32xf32>, vector<8x32xf32> -> vector<8x32xf32>
    %6 = arith.addf %1, %5 : vector<8x32xf32>
    %c0_7 = arith.constant 0 : index
    %c0_8 = arith.constant 0 : index
    %7 = vector.load %arg4[%c0_7, %c0_8] : memref<1x32xf32, #tpu.memory_space<vmem>>, vector<1x32xf32>
    %8 = vector.broadcast %7 : vector<1x32xf32> to vector<8x32xf32>
    %9 = arith.addf %6, %8 : vector<8x32xf32>
    %c0_9 = arith.constant 0 : index
    %c0_10 = arith.constant 0 : index
    %10 = vector.load %arg5[%c0_9, %c0_10] : memref<1x32xf32, #tpu.memory_space<vmem>>, vector<1x32xf32>
    %c0_11 = arith.constant 0 : index
    %c0_12 = arith.constant 0 : index
    %11 = vector.load %arg6[%c0_11, %c0_12] : memref<1x32xf32, #tpu.memory_space<vmem>>, vector<1x32xf32>
    %cst_13 = arith.constant dense<0.000000e+00> : vector<8xf32>
    %12 = vector.multi_reduction <add>, %9, %cst_13 [1] : vector<8x32xf32> to vector<8xf32>
    %13 = vector.shape_cast %12 : vector<8xf32> to vector<8x1xf32>
    %cst_14 = arith.constant 3.200000e+01 : f32
    %14 = vector.broadcast %cst_14 : f32 to vector<8x1xf32>
    %15 = arith.divf %13, %14 : vector<8x1xf32>
    %16 = vector.broadcast %15 : vector<8x1xf32> to vector<8x32xf32>
    %17 = arith.subf %9, %16 : vector<8x32xf32>
    %18 = arith.mulf %17, %17 : vector<8x32xf32>
    %cst_15 = arith.constant dense<0.000000e+00> : vector<8xf32>
    %19 = vector.multi_reduction <add>, %18, %cst_15 [1] : vector<8x32xf32> to vector<8xf32>
    %20 = vector.shape_cast %19 : vector<8xf32> to vector<8x1xf32>
    %cst_16 = arith.constant 3.200000e+01 : f32
    %21 = vector.broadcast %cst_16 : f32 to vector<8x1xf32>
    %22 = arith.divf %20, %21 : vector<8x1xf32>
    %23 = vector.broadcast %15 : vector<8x1xf32> to vector<8x32xf32>
    %24 = arith.subf %9, %23 : vector<8x32xf32>
    %cst_17 = arith.constant 9.99999974E-6 : f32
    %25 = vector.broadcast %cst_17 : f32 to vector<8x1xf32>
    %26 = arith.addf %22, %25 : vector<8x1xf32>
    %27 = math.rsqrt %26 : vector<8x1xf32>
    %28 = vector.broadcast %27 : vector<8x1xf32> to vector<8x32xf32>
    %29 = arith.mulf %24, %28 : vector<8x32xf32>
    %30 = vector.broadcast %10 : vector<1x32xf32> to vector<8x32xf32>
    %31 = arith.mulf %29, %30 : vector<8x32xf32>
    %32 = vector.broadcast %11 : vector<1x32xf32> to vector<8x32xf32>
    %33 = arith.addf %31, %32 : vector<8x32xf32>
    %c0_18 = arith.constant 0 : index
    %c0_19 = arith.constant 0 : index
    %34 = vector.load %arg7[%c0_18, %c0_19] : memref<32x64xf32, #tpu.memory_space<vmem>>, vector<32x64xf32>
    %cst_20 = arith.constant dense<0.000000e+00> : vector<8x64xf32>
    %35 = tpu.matmul %33, %34, %cst_20 {dimension_numbers = #tpu.dot_dimension_numbers<[1], [0], [0], [1], [0, 0, 1, 1], [], []>} : vector<8x32xf32>, vector<32x64xf32>, vector<8x64xf32> -> vector<8x64xf32>
    %c0_21 = arith.constant 0 : index
    %c0_22 = arith.constant 0 : index
    %36 = vector.load %arg8[%c0_21, %c0_22] : memref<1x64xf32, #tpu.memory_space<vmem>>, vector<1x64xf32>
    %37 = vector.broadcast %36 : vector<1x64xf32> to vector<8x64xf32>
    %38 = arith.addf %35, %37 : vector<8x64xf32>
    %cst_23 = arith.constant 0.000000e+00 : f32
    %39 = vector.broadcast %cst_23 : f32 to vector<8x64xf32>
    %40 = arith.maximumf %38, %39 : vector<8x64xf32>
    %c0_24 = arith.constant 0 : index
    %c0_25 = arith.constant 0 : index
    %41 = vector.load %arg9[%c0_24, %c0_25] : memref<64x32xf32, #tpu.memory_space<vmem>>, vector<64x32xf32>
    %cst_26 = arith.constant dense<0.000000e+00> : vector<8x32xf32>
    %42 = tpu.matmul %40, %41, %cst_26 {dimension_numbers = #tpu.dot_dimension_numbers<[1], [0], [0], [1], [0, 0, 1, 1], [], []>} : vector<8x64xf32>, vector<64x32xf32>, vector<8x32xf32> -> vector<8x32xf32>
    %43 = arith.addf %9, %42 : vector<8x32xf32>
    %c0_27 = arith.constant 0 : index
    %c0_28 = arith.constant 0 : index
    %44 = vector.load %arg10[%c0_27, %c0_28] : memref<1x32xf32, #tpu.memory_space<vmem>>, vector<1x32xf32>
    %45 = vector.broadcast %44 : vector<1x32xf32> to vector<8x32xf32>
    %46 = arith.addf %43, %45 : vector<8x32xf32>
    %c0_29 = arith.constant 0 : index
    %c0_30 = arith.constant 0 : index
    %c0_31 = arith.constant 0 : index
    %47 = vector.load %arg11[%c0_29, %c0_30, %c0_31] : memref<1x8x32xf32, #tpu.memory_space<vmem>>, vector<1x8x32xf32>
    %48 = vector.shape_cast %47 : vector<1x8x32xf32> to vector<8x32xf32>
    %49 = vector.shape_cast %46 : vector<8x32xf32> to vector<1x8x32xf32>
    tpu.vector_store %arg11[%c0_29, %c0_30, %c0_31], %49 {strides = array<i32>} : memref<1x8x32xf32, #tpu.memory_space<vmem>>, vector<1x8x32xf32>,
    return
  }
  func.func @transform_0(%arg0: i32) -> (i32, i32, i32) {
    %c0_i32 = arith.constant 0 : i32
    %c0_i32_0 = arith.constant 0 : i32
    %c0_i32_1 = arith.constant 0 : i32
    return %arg0, %c0_i32, %c0_i32_0 : i32, i32, i32
  }
  func.func @transform_1(%arg0: i32) -> (i32, i32, i32) {
    %c0_i32 = arith.constant 0 : i32
    %c0_i32_0 = arith.constant 0 : i32
    %c0_i32_1 = arith.constant 0 : i32
    return %arg0, %c0_i32, %c0_i32_0 : i32, i32, i32
  }
  func.func @transform_2(%arg0: i32) -> (i32, i32) {
    %c0_i32 = arith.constant 0 : i32
    %c0_i32_0 = arith.constant 0 : i32
    %c0_i32_1 = arith.constant 0 : i32
    return %c0_i32, %c0_i32_0 : i32, i32
  }
  func.func @transform_3(%arg0: i32) -> (i32, i32) {
    %c0_i32 = arith.constant 0 : i32
    %c0_i32_0 = arith.constant 0 : i32
    %c0_i32_1 = arith.constant 0 : i32
    return %c0_i32, %c0_i32_0 : i32, i32
  }
  func.func @transform_4(%arg0: i32) -> (i32, i32) {
    %c0_i32 = arith.constant 0 : i32
    %c0_i32_0 = arith.constant 0 : i32
    %c0_i32_1 = arith.constant 0 : i32
    return %c0_i32, %c0_i32_0 : i32, i32
  }
  func.func @transform_5(%arg0: i32) -> (i32, i32) {
    %c0_i32 = arith.constant 0 : i32
    %c0_i32_0 = arith.constant 0 : i32
    %c0_i32_1 = arith.constant 0 : i32
    return %c0_i32, %c0_i32_0 : i32, i32
  }
  func.func @transform_6(%arg0: i32) -> (i32, i32) {
    %c0_i32 = arith.constant 0 : i32
    %c0_i32_0 = arith.constant 0 : i32
    %c0_i32_1 = arith.constant 0 : i32
    return %c0_i32, %c0_i32_0 : i32, i32
  }
  func.func @transform_7(%arg0: i32) -> (i32, i32) {
    %c0_i32 = arith.constant 0 : i32
    %c0_i32_0 = arith.constant 0 : i32
    %c0_i32_1 = arith.constant 0 : i32
    return %c0_i32, %c0_i32_0 : i32, i32
  }
  func.func @transform_8(%arg0: i32) -> (i32, i32) {
    %c0_i32 = arith.constant 0 : i32
    %c0_i32_0 = arith.constant 0 : i32
    %c0_i32_1 = arith.constant 0 : i32
    return %c0_i32, %c0_i32_0 : i32, i32
  }
  func.func @transform_9(%arg0: i32) -> (i32, i32) {
    %c0_i32 = arith.constant 0 : i32
    %c0_i32_0 = arith.constant 0 : i32
    %c0_i32_1 = arith.constant 0 : i32
    return %c0_i32, %c0_i32_0 : i32, i32
  }
  func.func @transform_10(%arg0: i32) -> (i32, i32, i32) {
    %c0_i32 = arith.constant 0 : i32
    %c0_i32_0 = arith.constant 0 : i32
    %c0_i32_1 = arith.constant 0 : i32
    return %arg0, %c0_i32, %c0_i32_0 : i32, i32, i32
  }
}

</mosaic_0001>

<bundles_post_ra>
// kernel: decoder.11
= control target key start
LH: loop header
LB: loop body
LE: loop exit
PB: predicated region body
PF: predicated region fallthrough
CT: control target
= control target key end

     0   :  { %15 = vsyncpa [#allocation3], 0  ;;  %s1197_s0 = inlined_call_operand.vmem [shape: f32[2,8,32], index: 0, kind: input, shape index: {}]   ;;  %s1198_s1 = inlined_call_operand.vmem [shape: f32[2,8,32], index: 1, kind: input, shape index: {}]   ;;  %s1199_s2 = inlined_call_operand.vmem [shape: f32[32,32], index: 2, kind: input, shape index: {}]   ;;  %s1200_s3 = inlined_call_operand.vmem [shape: f32[1,32], index: 3, kind: input, shape index: {}]   ;;  %s1201_s4 = inlined_call_operand.vmem [shape: f32[1,32], index: 4, kind: input, shape index: {}]   ;;  %s1202_s5 = inlined_call_operand.vmem [shape: f32[1,32], index: 5, kind: input, shape index: {}]   ;;  %s1203_s6 = inlined_call_operand.vmem [shape: f32[32,64], index: 6, kind: input, shape index: {}]   ;;  %s1204_s7 = inlined_call_operand.vmem [shape: f32[1,64], index: 7, kind: input, shape index: {}]   ;;  %s1205_s8 = inlined_call_operand.vmem [shape: f32[64,32], index: 8, kind: input, shape index: {}]   ;;  %s1206_s9 = inlined_call_operand.vmem [shape: f32[1,32], index: 9, kind: input, shape index: {}]   ;;  %s1207_s10 = inlined_call_operand.hbm [shape: f32[2,8,32], index: 10, kind: output, shape index: {}]  }
   0x1   :  { %17 = vsyncpa [#allocation3 + $0x1], 0  ;;  %s1023_s13 = smov 0   ;;  %s1025_s14 = smov 0  }
   0x2   :  { %s1027_s15 = smov 0   ;;  %s1029_s16 = smov 0  }
   0x3 LB: > { %s1044_s17 = sadd.s32 4294967295, %s962_s16   ;;  %s753_s18 = sadd.s32 4294967294, %s962_s16   ;;  %s962_s16 = sphi %s1029_s16, %s1213_s16   ;;  %s958_s15 = sphi %s1027_s15, %s1212_s15   ;;  %s954_s14 = sphi %s1025_s14, %s1211_s14   ;;  %s950_s13 = sphi %s1023_s13, %s1210_s13  }
   0x4   : > { %s1048_s19 = sadd.s32 1, %s962_s16   ;;  %s250_s20 = sadd.s32 1, %s958_s15 }
   0x5   : > { %s247_s21 = ssub.s32 %s962_s16, %s1048_s19  ;;  %p260_p0 = scmp.ne.s32.totalorder %s958_s15, %s954_s14 }
   0x6   : > { %p248_p1 = scmp.eq.s32.totalorder %s247_s21, 0  ;;  %p261_p2 = scmp.eq.s32.totalorder %s1044_s17, 1 }
   0x7   : > { %p266_p3 = scmp.ne.s32.totalorder %s954_s14, %s950_s13  ;;  %p267_p4 = scmp.eq.s32.totalorder %s753_s18, 1 }
   0x8   : > { %s1059_s22 = scalar_select %p248_p1, %s958_s15, %s250_s20  }
   0x9   : > { %p1061_p5 = por %p261_p2, %p260_p0  ;;  %p1065_p6 = por %p267_p4, %p266_p3 }
   0xa   : > { %p756_p7 = scmp.ge.s32.totalorder %s962_s16, 1  ;;  %p323_p8 = scmp.lt.s32.totalorder %s962_s16, 3 }
   0xc   : > { %p324_p9 = pnand %p756_p7, %p323_p8 }
   0xd   : > { %v374_v0 = vld [vmem:[%s1199_s2] sm:$0xff] (!%p324_p9)  ;;  %v375_v1 = vld [vmem:[%s1199_s2 + $0x8] sm:$0xff] (!%p324_p9)  ;;  %v376_v2 = vld [vmem:[%s1199_s2 + $0x10] sm:$0xff] (!%p324_p9)  ;;  %v964_v3 = vmov (!%p324_p9), 0.0|0.0   ;;  %vm965_vm0 = vmmov (!%p324_p9), 0   ;;  %v966_v6 = vmov (!%p324_p9), 0.0  }
   0xe   : > { %327 = sbr.rel (%p324_p9) target bundleno = 1001 (0x3e9), region = 60  ;;  %832 = vmatprep.subr.bf16.mxu1 (!%p324_p9), %v964_v3  ;;  %v833_v4 = vpack.c.bf16 (!%p324_p9), %v375_v1, %v374_v0  ;;  %v377_v5 = vld [vmem:[%s1199_s2 + $0x18] sm:$0xff] (!%p324_p9)  ;;  %799 = vmatprep.mubr.msk.f32.mxu1 (!%p324_p9), %vm965_vm0, %v966_v6  ;;  %p364_p10 = scmp.lt.s32.totalorder (!%p324_p9), %s1044_s17, 1  ;;  %vm378_vm1 = vcmask (!%p324_p9), 261120   ;;  %v761_v11 = vld [vmem:[%s1200_s3] ss:$0 sm:$0xff] (!%p324_p9) }
   0xf   : > { %844 = vmatprep.subr.bf16.mxu0 (!%p324_p9), %v964_v3  ;;  %829 = vmatprep.mubr.msk.f32.mxu0 (!%p324_p9), %vm965_vm0, %v966_v6  ;;  %v836_v7 = vpack.c.bf16 (!%p324_p9), %v377_v5, %v376_v2  ;;  %v491_v21 = vld [vmem:[%s1203_s6] sm:$0xff] (!%p324_p9)  ;;  %v492_v22 = vld [vmem:[%s1203_s6 + $0x8] sm:$0xff] (!%p324_p9)  ;;  %v493_v24 = vld [vmem:[%s1203_s6 + $0x10] sm:$0xff] (!%p324_p9)  ;;  %vm584_vm2 = vcmask (!%p324_p9), 523264  }
  0x10   : > { %834 = vmatpush3.bf16.msra.mxu1 (!%p324_p9), %v833_v4  ;;  %v839_v23 = vpack.c.bf16 (!%p324_p9), %v492_v22, %v491_v21  ;;  %v494_v25 = vld [vmem:[%s1203_s6 + $0x18] sm:$0xff] (!%p324_p9)  ;;  %v576_v27 = vld [vmem:[%s1205_s8] sm:$0xff] (!%p324_p9)  ;;  %v577_v28 = vld [vmem:[%s1205_s8 + $0x8] sm:$0xff] (!%p324_p9) }
  0x11   : > { %835 = vmatprep.subr.bf16.mxu1 (!%p324_p9), %v964_v3  ;;  %v842_v26 = vpack.c.bf16 (!%p324_p9), %v494_v25, %v493_v24  ;;  %v578_v29 = vld [vmem:[%s1205_s8 + $0x10] sm:$0xff] (!%p324_p9)  ;;  %v845_v30 = vpack.c.bf16 (!%p324_p9), %v577_v28, %v576_v27  ;;  %v579_v31 = vld [vmem:[%s1205_s8 + $0x18] sm:$0xff] (!%p324_p9)  ;;  %v580_v33 = vld [vmem:[%s1205_s8 + $0x20] sm:$0xff] (!%p324_p9) }
  0x12   : > { %v848_v32 = vpack.c.bf16 (!%p324_p9), %v579_v31, %v578_v29  ;;  %v581_v34 = vld [vmem:[%s1205_s8 + $0x28] sm:$0xff] (!%p324_p9)  ;;  %v762_v40 = vld [vmem:[%s1201_s4] ss:$0 sm:$0xff] (!%p324_p9)  ;;  %v582_v45 = vld [vmem:[%s1205_s8 + $0x30] sm:$0xff] (!%p324_p9) }
  0x13   : > { %846 = vmatpush3.bf16.msra.mxu0 (!%p324_p9), %v845_v30  ;;  %v851_v35 = vpack.c.bf16 (!%p324_p9), %v581_v34, %v580_v33  ;;  %v763_v42 = vld [vmem:[%s1202_s5] ss:$0 sm:$0xff] (!%p324_p9)  ;;  %v583_v46 = vld [vmem:[%s1205_s8 + $0x38] sm:$0xff] (!%p324_p9) }
  0x14   : > { %837 = vmatpush3.bf16.msra.mxu1 (!%p324_p9), %v836_v7  ;;  %847 = vmatprep.subr.bf16.mxu0 (!%p324_p9), %v964_v3  ;;  %v854_v47 = vpack.c.bf16 (!%p324_p9), %v583_v46, %v582_v45  ;;  %v764_v48 = vld [vmem:[%s1204_s7] ss:$0 sm:$0xff] (!%p324_p9) }
  0x15   : > { %s365_s18 = scalar_select %p364_p10, %s1044_s17, 1  ;;  %838 = vmatprep.subr.bf16.mxu1 %v964_v3  ;;  %v767_v54 = vld [vmem:[%s1206_s9] ss:$0 sm:$0xff] }
  0x17   : > { %s758_s20 = sshll.u32 %s365_s18, 3  ;;  %849 = vmatpush3.bf16.msra.mxu0 %v848_v32  ;;  %s769_s18 = sshll.u32 %s1044_s17, 7 }
  0x18   : > { %s371_s26 = scalar_lea.vmem %s1198_s1, %s758_s20  ;;  %s367_s29 = scalar_lea.vmem %s1197_s0, %s758_s20  ;;  %850 = vmatprep.subr.bf16.mxu0 %v964_v3 }
  0x19   : > { %v373_v8 = vld [vmem:[%s371_s26] sm:$0xff]  ;;  %s1154_s27 = scalar_lea.hbm %s1207_s10, %s769_s18  ;;  %s967_s17 = smov [#allocation2]  }
  0x1a   : > { %800 = vmatmul.mubr.msk.f32.vlgmr.msra.gmra.mrb[0].mxu1 %vm378_vm1, %v373_v8  ;;  %v372_v9 = vld [vmem:[%s367_s29] sm:$0xff]  ;;  %s361_s29 = sand.u32 1, %s954_s14  }
  0x1b   : > { %810 = vmatprep.mubr.msk.f32.mxu1 %vm965_vm0, %v966_v6  ;;  %840 = vmatpush3.bf16.msra.mxu1 %v839_v23  ;;  %s757_s30 = sshll.u32 %s361_s29, 3  ;;  %s669_s28 = scalar_lea.sflag [#allocation3], %s361_s29 }
  0x1c   : > { %841 = vmatprep.subr.bf16.mxu1 %v964_v3  ;;  %852 = vmatpush3.bf16.msra.mxu0 %v851_v35  ;;  %s363_s20 = scalar_lea.vmem [#allocation2], %s757_s30  ;;  %s904_s30 = sshll.u32 %s967_s17, 4  ;;  %s905_s30 = int_to_ptr.vmem [resolvable:$false] %s904_s30 }
  0x1d   : > { %853 = vmatprep.subr.bf16.mxu0 %v964_v3  ;;  %s682_s21 = sshll.u32 %s363_s20, 4  ;;  %s906_s12 = scalar_lea.vmem %s905_s30, 256  ;;  %s1156_s21 = int_to_ptr.vmem [resolvable:$true] %s682_s21 }
  0x1e   : > { %s900_s11 = scalar_lea.vmem %s1156_s21, 128  ;;  %p907_p0 = scmp.lt.s32.totalorder %s1156_s21, %s905_s30 }
  0x1f   : > { %843 = vmatpush3.bf16.msra.mxu1 %v842_v26  ;;  %p901_p11 = scmp.ne.s32.totalorder %s1156_s21, %s900_s11  ;;  %p908_p1 = scmp.lt.s32.totalorder %s906_s12, %s900_s11 }
  0x20   : > { %855 = vmatpush3.bf16.msra.mxu0 %v854_v47 }
  0x21   : > { %p902_p12 = pnand %p901_p11, %p1061_p5  ;;  %p909_p2 = por %p908_p1, %p907_p0 }
  0x23   : > { %p903_p13 = pneg %p902_p12 }
  0x25   : > { %p910_p3 = pnand %p909_p2, %p903_p13 }
  0xed   : > { %v448_v10 = vpop.f32.mrb[0].mxu1 }
  0xee   : > { %v452_v12 = vadd.f32 %v448_v10, %v372_v9  ;;  %v801_v13 = vpop.f32.mrb[1].mxu1 }
  0xf0   : > { %v460_v14 = vadd.f32 %v761_v11, %v452_v12 }
  0xf2   : > { %v463_v15 = vsel %vm378_vm1, %v460_v14, 0.0 }
  0xf3   : > { %464 = vadd.xlane.f32.xlu0 %v463_v15 }
 0x180   : > { %v465_v16 = vpop.xlane.xlu0 %464 }
 0x181   : > { %v467_v17 = vmul.f32 0.03125, %v465_v16 }
 0x183   : > { %v468_v18 = vsub.f32 %v460_v14, %v467_v17 }
 0x185   : > { %v469_v19 = vmul.f32 %v468_v18, %v468_v18 }
 0x187   : > { %v470_v20 = vsel %vm378_vm1, %v469_v19, 0.0 }
 0x188   : > { %471 = vadd.xlane.f32.xlu0 %v470_v20 }
 0x215   : > { %v472_v36 = vpop.xlane.xlu0 %471 }
 0x216   : > { %v473_v37 = vmul.f32 0.03125, %v472_v36 }
 0x218   : > { %v474_v38 = vadd.f32 1e-05, %v473_v37 }
 0x21a   : > { %898 = vrsqrt.f32 %v474_v38 }
 0x224   : > { %v899_v39 = vpop.eup %898 }
 0x225   : > { %v476_v41 = vmul.f32 %v899_v39, %v468_v18 }
 0x227   : > { %v483_v43 = vmul.f32 %v762_v40, %v476_v41 }
 0x229   : > { %v490_v44 = vadd.f32 %v763_v42, %v483_v43 }
 0x22b   : > { %811 = vmatmul.mubr.msk.f32.vlgmr.msra.gmra.mrb[2].mxu1 %vm378_vm1, %v490_v44 }
 0x2fe   : > { %v571_v49 = vpop.f32.mrb[2].mxu1 }
 0x2ff   : > { %v572_v50 = vadd.f32 %v764_v48, %v571_v49  ;;  %v812_v51 = vpop.f32.mrb[3].mxu1 }
 0x301   : > { %v575_v52 = vmax.f32 %v572_v50, 0.0 }
 0x303   : > { %830 = vmatmul.mubr.msk.f32.vlgmr.msra.gmra.mrb[0].mxu0 %vm584_vm2, %v575_v52 }
 0x3d6   : > { %v654_v53 = vpop.f32.mrb[0].mxu0 }
 0x3d7   : > { %v658_v55 = vadd.f32 %v654_v53, %v460_v14  ;;  %v831_v56 = vpop.f32.mrb[1].mxu0 }
 0x3d9   : > { %v666_v57 = vadd.f32 %v767_v54, %v658_v55 }
 0x3db   : > { %667 = vst.msk [vmem:[%s363_s20] sm:$0xff] %vm378_vm1, %v666_v57 }
 0x3dc   : > { %913 = shalt.err (!%p910_p3)
}
 0x3dd   : > { %s914_s29 = scalar_lea.hbm %s1154_s27, 128  ;;  %s918_s25 = scalar_lea.hbm %s1207_s10, 256 }
 0x3de   : > { %p915_p4 = scmp.ne.s32.totalorder %s1154_s27, %s914_s29  ;;  %p919_p9 = scmp.lt.u32.totalorder %s1154_s27, %s1207_s10 }
 0x3df   : > { %p920_p10 = scmp.lt.u32.totalorder %s918_s25, %s914_s29  ;;  %p922_p12 = scmp.lt.u32.totalorder %s914_s29, %s1154_s27 }
 0x3e0   : > { %p916_p7 = pnand %p915_p4, %p1061_p5 }
 0x3e1   : > { %p921_p11 = por %p920_p10, %p919_p9 }
 0x3e2   : > { %p917_p8 = pneg %p916_p7 }
 0x3e3   : > { %p923_p13 = por %p922_p12, %p921_p11 }
 0x3e5   : > { %p924_p0 = pnand %p923_p13, %p917_p8 }
 0x3e7   : > { %927 = shalt.err (!%p924_p0)
}
 0x3e8   : > { %856 = dma.vmem_to_hbm [thread:$0]  (%p1061_p5), %s1156_s21, 128, %s1154_s27, %s669_s28  }
 0x3e9 PF: > { %p862_p1 = scmp.ge.s32.totalorder %s962_s16, 2  ;;  %s694_s11 = sand.u32 1, %s950_s13  }
 0x3ea   : > { %s695_s30 = scalar_lea.sflag [#allocation3], %s694_s11 }
 0x3eb   : > { %p859_p2 = pnand %p862_p1, %p1065_p6 }
 0x3ed   : > { %945 = dma.done.wait (!%p859_p2), %s695_s30, 128  }
 0x3ee   : > { %947 = vsyncadd (!%p859_p2), %s695_s30, 4294967168  ;;  %p20_p3 = scmp.ge.s32.totalorder %s1048_s19, 4   ;;  %s1210_s13 = smov %s954_s14 }
 0x3ef   : > { %s1211_s14 = smov %s958_s15  ;;  %s1212_s15 = smov %s1059_s22 }
 0x3f0   : > { %s1213_s16 = smov %s1048_s19  ;;  %22 = sbr.rel (!%p20_p3) target bundleno = 3 (0x3), region = 98 }
 0x3f7   :  { %700 = vsyncpa [#allocation3], 1 }
 0x3f8   :  { %702 = vsyncpa [#allocation3 + $0x1], 1 }

// kernel: decoder.8
= control target key start
LH: loop header
LB: loop body
LE: loop exit
PB: predicated region body
PF: predicated region fallthrough
CT: control target
= control target key end

     0   :  { %s914_s13 = smov 0   ;;  %s1010_s0 = inlined_call_operand.vmem [shape: f32[2,8,32], index: 0, kind: input, shape index: {}]   ;;  %s1011_s1 = inlined_call_operand.vmem [shape: f32[2,8,32], index: 1, kind: input, shape index: {}]   ;;  %s1012_s2 = inlined_call_operand.vmem [shape: f32[32,32], index: 2, kind: input, shape index: {}]   ;;  %s1013_s3 = inlined_call_operand.vmem [shape: f32[1,32], index: 3, kind: input, shape index: {}]   ;;  %s1014_s4 = inlined_call_operand.vmem [shape: f32[1,32], index: 4, kind: input, shape index: {}]   ;;  %s1015_s5 = inlined_call_operand.vmem [shape: f32[1,32], index: 5, kind: input, shape index: {}]   ;;  %s1016_s6 = inlined_call_operand.vmem [shape: f32[32,64], index: 6, kind: input, shape index: {}]   ;;  %s1017_s7 = inlined_call_operand.vmem [shape: f32[1,64], index: 7, kind: input, shape index: {}]   ;;  %s1018_s8 = inlined_call_operand.vmem [shape: f32[64,32], index: 8, kind: input, shape index: {}]   ;;  %s1019_s9 = inlined_call_operand.vmem [shape: f32[1,32], index: 9, kind: input, shape index: {}]   ;;  %s1020_s10 = inlined_call_operand.vmem [shape: f32[2,8,32], index: 10, kind: output, shape index: {}]  }
   0x1 LB: > { %s733_s14 = sadd.s32 4294967295, %s854_s13   ;;  %p737_p0 = scmp.ge.s32.totalorder %s854_s13, 1  ;;  %s854_s13 = sphi %s914_s13, %s20_s13  }
   0x2   : > { %p320_p1 = scmp.lt.s32.totalorder %s854_s13, 3 }
   0x4   : > { %p321_p2 = pnand %p737_p0, %p320_p1 }
   0x5   : > { %v374_v0 = vld [vmem:[%s1012_s2] sm:$0xff] (!%p321_p2)  ;;  %v375_v1 = vld [vmem:[%s1012_s2 + $0x8] sm:$0xff] (!%p321_p2)  ;;  %v376_v2 = vld [vmem:[%s1012_s2 + $0x10] sm:$0xff] (!%p321_p2)  ;;  %v856_v3 = vmov (!%p321_p2), 0.0|0.0   ;;  %vm857_vm0 = vmmov (!%p321_p2), 0   ;;  %v858_v6 = vmov (!%p321_p2), 0.0  }
   0x6   : > { %324 = sbr.rel (%p321_p2) target bundleno = 979 (0x3d3), region = 60  ;;  %811 = vmatprep.subr.bf16.mxu1 (!%p321_p2), %v856_v3  ;;  %v812_v4 = vpack.c.bf16 (!%p321_p2), %v375_v1, %v374_v0  ;;  %v377_v5 = vld [vmem:[%s1012_s2 + $0x18] sm:$0xff] (!%p321_p2)  ;;  %778 = vmatprep.mubr.msk.f32.mxu1 (!%p321_p2), %vm857_vm0, %v858_v6  ;;  %p360_p3 = scmp.lt.s32.totalorder (!%p321_p2), %s733_s14, 1  ;;  %vm378_vm1 = vcmask (!%p321_p2), 261120   ;;  %v742_v11 = vld [vmem:[%s1013_s3] ss:$0 sm:$0xff] (!%p321_p2) }
   0x7   : > { %823 = vmatprep.subr.bf16.mxu0 (!%p321_p2), %v856_v3  ;;  %808 = vmatprep.mubr.msk.f32.mxu0 (!%p321_p2), %vm857_vm0, %v858_v6  ;;  %v815_v7 = vpack.c.bf16 (!%p321_p2), %v377_v5, %v376_v2  ;;  %v491_v21 = vld [vmem:[%s1016_s6] sm:$0xff] (!%p321_p2)  ;;  %v492_v22 = vld [vmem:[%s1016_s6 + $0x8] sm:$0xff] (!%p321_p2)  ;;  %v493_v24 = vld [vmem:[%s1016_s6 + $0x10] sm:$0xff] (!%p321_p2)  ;;  %vm584_vm2 = vcmask (!%p321_p2), 523264  }
   0x8   : > { %813 = vmatpush3.bf16.msra.mxu1 (!%p321_p2), %v812_v4  ;;  %v818_v23 = vpack.c.bf16 (!%p321_p2), %v492_v22, %v491_v21  ;;  %v494_v25 = vld [vmem:[%s1016_s6 + $0x18] sm:$0xff] (!%p321_p2)  ;;  %v576_v27 = vld [vmem:[%s1018_s8] sm:$0xff] (!%p321_p2)  ;;  %v577_v28 = vld [vmem:[%s1018_s8 + $0x8] sm:$0xff] (!%p321_p2) }
   0x9   : > { %814 = vmatprep.subr.bf16.mxu1 (!%p321_p2), %v856_v3  ;;  %v821_v26 = vpack.c.bf16 (!%p321_p2), %v494_v25, %v493_v24  ;;  %v578_v29 = vld [vmem:[%s1018_s8 + $0x10] sm:$0xff] (!%p321_p2)  ;;  %v824_v30 = vpack.c.bf16 (!%p321_p2), %v577_v28, %v576_v27  ;;  %v579_v31 = vld [vmem:[%s1018_s8 + $0x18] sm:$0xff] (!%p321_p2)  ;;  %v580_v33 = vld [vmem:[%s1018_s8 + $0x20] sm:$0xff] (!%p321_p2) }
   0xa   : > { %v827_v32 = vpack.c.bf16 (!%p321_p2), %v579_v31, %v578_v29  ;;  %v581_v34 = vld [vmem:[%s1018_s8 + $0x28] sm:$0xff] (!%p321_p2)  ;;  %v743_v40 = vld [vmem:[%s1014_s4] ss:$0 sm:$0xff] (!%p321_p2)  ;;  %v582_v45 = vld [vmem:[%s1018_s8 + $0x30] sm:$0xff] (!%p321_p2) }
   0xb   : > { %825 = vmatpush3.bf16.msra.mxu0 (!%p321_p2), %v824_v30  ;;  %v830_v35 = vpack.c.bf16 (!%p321_p2), %v581_v34, %v580_v33  ;;  %v744_v42 = vld [vmem:[%s1015_s5] ss:$0 sm:$0xff] (!%p321_p2)  ;;  %v583_v46 = vld [vmem:[%s1018_s8 + $0x38] sm:$0xff] (!%p321_p2) }
   0xc   : > { %816 = vmatpush3.bf16.msra.mxu1 (!%p321_p2), %v815_v7  ;;  %826 = vmatprep.subr.bf16.mxu0 (!%p321_p2), %v856_v3  ;;  %v833_v47 = vpack.c.bf16 (!%p321_p2), %v583_v46, %v582_v45  ;;  %v745_v48 = vld [vmem:[%s1017_s7] ss:$0 sm:$0xff] (!%p321_p2) }
   0xd   : > { %s1022_s14 = smov (!%p360_p3, %s733_s14), 1  ;;  %817 = vmatprep.subr.bf16.mxu1 %v856_v3  ;;  %v748_v54 = vld [vmem:[%s1019_s9] ss:$0 sm:$0xff] }
   0xe   : > { %s936_s23 = sshll.u32 %s1022_s14, 3 }
   0xf   : > { %s367_s26 = scalar_lea.vmem %s1011_s1, %s936_s23  ;;  %s363_s29 = scalar_lea.vmem %s1010_s0, %s936_s23  ;;  %828 = vmatpush3.bf16.msra.mxu0 %v827_v32 }
  0x10   : > { %v373_v8 = vld [vmem:[%s367_s26] sm:$0xff]  ;;  %829 = vmatprep.subr.bf16.mxu0 %v856_v3  ;;  %s371_s30 = scalar_lea.vmem %s1020_s10, %s936_s23 }
  0x11   : > { %779 = vmatmul.mubr.msk.f32.vlgmr.msra.gmra.mrb[0].mxu1 %vm378_vm1, %v373_v8  ;;  %v372_v9 = vld [vmem:[%s363_s29] sm:$0xff] }
  0x12   : > { %789 = vmatprep.mubr.msk.f32.mxu1 %vm857_vm0, %v858_v6  ;;  %819 = vmatpush3.bf16.msra.mxu1 %v818_v23 }
  0x13   : > { %820 = vmatprep.subr.bf16.mxu1 %v856_v3  ;;  %831 = vmatpush3.bf16.msra.mxu0 %v830_v35 }
  0x14   : > { %832 = vmatprep.subr.bf16.mxu0 %v856_v3 }
  0x16   : > { %822 = vmatpush3.bf16.msra.mxu1 %v821_v26 }
  0x17   : > { %834 = vmatpush3.bf16.msra.mxu0 %v833_v47 }
  0xe4   : > { %v448_v10 = vpop.f32.mrb[0].mxu1 }
  0xe5   : > { %v452_v12 = vadd.f32 %v448_v10, %v372_v9  ;;  %v780_v13 = vpop.f32.mrb[1].mxu1 }
  0xe7   : > { %v460_v14 = vadd.f32 %v742_v11, %v452_v12 }
  0xe9   : > { %v463_v15 = vsel %vm378_vm1, %v460_v14, 0.0 }
  0xea   : > { %464 = vadd.xlane.f32.xlu0 %v463_v15 }
 0x177   : > { %v465_v16 = vpop.xlane.xlu0 %464 }
 0x178   : > { %v467_v17 = vmul.f32 0.03125, %v465_v16 }
 0x17a   : > { %v468_v18 = vsub.f32 %v460_v14, %v467_v17 }
 0x17c   : > { %v469_v19 = vmul.f32 %v468_v18, %v468_v18 }
 0x17e   : > { %v470_v20 = vsel %vm378_vm1, %v469_v19, 0.0 }
 0x17f   : > { %471 = vadd.xlane.f32.xlu0 %v470_v20 }
 0x20c   : > { %v472_v36 = vpop.xlane.xlu0 %471 }
 0x20d   : > { %v473_v37 = vmul.f32 0.03125, %v472_v36 }
 0x20f   : > { %v474_v38 = vadd.f32 1e-05, %v473_v37 }
 0x211   : > { %846 = vrsqrt.f32 %v474_v38 }
 0x21b   : > { %v847_v39 = vpop.eup %846 }
 0x21c   : > { %v476_v41 = vmul.f32 %v847_v39, %v468_v18 }
 0x21e   : > { %v483_v43 = vmul.f32 %v743_v40, %v476_v41 }
 0x220   : > { %v490_v44 = vadd.f32 %v744_v42, %v483_v43 }
 0x222   : > { %790 = vmatmul.mubr.msk.f32.vlgmr.msra.gmra.mrb[2].mxu1 %vm378_vm1, %v490_v44 }
 0x2f5   : > { %v571_v49 = vpop.f32.mrb[2].mxu1 }
 0x2f6   : > { %v572_v50 = vadd.f32 %v745_v48, %v571_v49  ;;  %v791_v51 = vpop.f32.mrb[3].mxu1 }
 0x2f8   : > { %v575_v52 = vmax.f32 %v572_v50, 0.0 }
 0x2fa   : > { %809 = vmatmul.mubr.msk.f32.vlgmr.msra.gmra.mrb[0].mxu0 %vm584_vm2, %v575_v52 }
 0x3cd   : > { %v654_v53 = vpop.f32.mrb[0].mxu0 }
 0x3ce   : > { %v658_v55 = vadd.f32 %v654_v53, %v460_v14  ;;  %v810_v56 = vpop.f32.mrb[1].mxu0 }
 0x3d0   : > { %v666_v57 = vadd.f32 %v748_v54, %v658_v55 }
 0x3d2   : > { %667 = vst.msk [vmem:[%s371_s30] sm:$0xff] %vm378_vm1, %v666_v57 }
 0x3d3 PF: > { %s20_s13 = sadd.s32 1, %s854_s13  }
 0x3d4   : > { %p17_p4 = scmp.ge.s32.totalorder %s20_s13, 4  }
 0x3d6   :  { %19 = sbr.rel (!%p17_p4) target bundleno = 1 (0x1), region = 93 }

// kernel: decoder.6
= control target key start
LH: loop header
LB: loop body
LE: loop exit
PB: predicated region body
PF: predicated region fallthrough
CT: control target
= control target key end

     0   :  { %s1623_s13 = smov 0   ;;  %s1772_s0 = inlined_call_operand.vmem [shape: f32[2,8,32], index: 0, kind: input, shape index: {}]   ;;  %s1773_s1 = inlined_call_operand.vmem [shape: f32[1,1,8,8], index: 1, kind: input, shape index: {}]   ;;  %s1774_s2 = inlined_call_operand.vmem [shape: f32[1,32], index: 2, kind: input, shape index: {}]   ;;  %s1775_s3 = inlined_call_operand.vmem [shape: f32[1,32], index: 3, kind: input, shape index: {}]   ;;  %s1776_s4 = inlined_call_operand.vmem [shape: f32[32,32], index: 4, kind: input, shape index: {}]   ;;  %s1777_s5 = inlined_call_operand.vmem [shape: f32[1,32], index: 5, kind: input, shape index: {}]   ;;  %s1778_s6 = inlined_call_operand.vmem [shape: f32[32,32], index: 6, kind: input, shape index: {}]   ;;  %s1779_s7 = inlined_call_operand.vmem [shape: f32[1,32], index: 7, kind: input, shape index: {}]   ;;  %s1780_s8 = inlined_call_operand.vmem [shape: f32[32,32], index: 8, kind: input, shape index: {}]   ;;  %s1781_s9 = inlined_call_operand.vmem [shape: f32[1,32], index: 9, kind: input, shape index: {}]   ;;  %s1782_s10 = inlined_call_operand.vmem [shape: f32[2,4,8,8], index: 10, kind: output, shape index: {}]  }
   0x1 LB: > { %s1366_s14 = sadd.s32 4294967295, %s1560_s13   ;;  %p1370_p0 = scmp.ge.s32.totalorder %s1560_s13, 1  ;;  %s1560_s13 = sphi %s1623_s13, %s20_s13  }
   0x2   : > { %p311_p1 = scmp.lt.s32.totalorder %s1560_s13, 3 }
   0x4   : > { %p312_p2 = pnand %p1370_p0, %p311_p1 }
   0x5   : > { %p348_p3 = scmp.lt.s32.totalorder (!%p312_p2), %s1366_s14, 1  ;;  %vm360_vm0 = vcmask (!%p312_p2), 261120   ;;  %v389_v7 = vld [vmem:[%s1776_s4] sm:$0xff] (!%p312_p2)  ;;  %v390_v8 = vld [vmem:[%s1776_s4 + $0x8] sm:$0xff] (!%p312_p2)  ;;  %v1562_v10 = vmov (!%p312_p2), 0.0|0.0   ;;  %v391_v13 = vld [vmem:[%s1776_s4 + $0x10] sm:$0xff] (!%p312_p2) }
   0x6   : > { %315 = sbr.rel (%p312_p2) target bundleno = 1459 (0x5b3), region = 60  ;;  %v394_v9 = vld [vmem:[%s1778_s6] sm:$0xff] (!%p312_p2)  ;;  %1504 = vmatprep.subr.bf16.mxu0 (!%p312_p2), %v1562_v10  ;;  %v1505_v11 = vpack.c.bf16 (!%p312_p2), %v390_v8, %v389_v7  ;;  %1510 = vmatprep.subr.bf16.mxu1 (!%p312_p2), %v1562_v10  ;;  %v395_v12 = vld [vmem:[%s1778_s6 + $0x8] sm:$0xff] (!%p312_p2)  ;;  %v392_v14 = vld [vmem:[%s1776_s4 + $0x18] sm:$0xff] (!%p312_p2)  ;;  %vm1563_vm1 = vmmov (!%p312_p2), 0   ;;  %v1564_v18 = vmov (!%p312_p2), 0.0  }
   0x7   : > { %v1511_v15 = vpack.c.bf16 (!%p312_p2), %v395_v12, %v394_v9  ;;  %v396_v16 = vld [vmem:[%s1778_s6 + $0x10] sm:$0xff] (!%p312_p2)  ;;  %v397_v17 = vld [vmem:[%s1778_s6 + $0x18] sm:$0xff] (!%p312_p2)  ;;  %1439 = vmatprep.mubr.msk.f32.mxu0 (!%p312_p2), %vm1563_vm1, %v1564_v18  ;;  %1450 = vmatprep.mubr.msk.f32.mxu1 (!%p312_p2), %vm1563_vm1, %v1564_v18  ;;  %v1508_v19 = vpack.c.bf16 (!%p312_p2), %v392_v14, %v391_v13  ;;  %v1374_v25 = vld [vmem:[%s1774_s2] ss:$0 sm:$0xff] (!%p312_p2)  ;;  %vm635_vm2 = vcmask (!%p312_p2), 64512   ;;  %s1566_s16 = smov (!%p312_p2), 120  }
   0x8   : > { %1506 = vmatpush3.bf16.msra.mxu0 (!%p312_p2), %v1505_v11  ;;  %v1514_v20 = vpack.c.bf16 (!%p312_p2), %v397_v17, %v396_v16  ;;  %v399_v27 = vld [vmem:[%s1780_s8] sm:$0xff] (!%p312_p2)  ;;  %v400_v28 = vld [vmem:[%s1780_s8 + $0x8] sm:$0xff] (!%p312_p2)  ;;  %v401_v33 = vld [vmem:[%s1780_s8 + $0x10] sm:$0xff] (!%p312_p2)  ;;  %s1567_s19 = smov (!%p312_p2), 104  }
   0x9   : > { %1512 = vmatpush3.bf16.msra.mxu1 (!%p312_p2), %v1511_v15  ;;  %1507 = vmatprep.subr.bf16.mxu0 (!%p312_p2), %v1562_v10  ;;  %v1375_v29 = vld [vmem:[%s1775_s3] ss:$0 sm:$0xff] (!%p312_p2)  ;;  %v1517_v31 = vpack.c.bf16 (!%p312_p2), %v400_v28, %v399_v27  ;;  %v402_v34 = vld [vmem:[%s1780_s8 + $0x18] sm:$0xff] (!%p312_p2) }
   0xa   : > { %1513 = vmatprep.subr.bf16.mxu1 (!%p312_p2), %v1562_v10  ;;  %v1520_v35 = vpack.c.bf16 (!%p312_p2), %v402_v34, %v401_v33  ;;  %v1378_v36 = vld [vmem:[%s1779_s7] ss:$0 sm:$0xff] (!%p312_p2) }
   0xb   : > { %v1376_v42 = vld [vmem:[%s1777_s5] ss:$0 sm:$0xff] (!%p312_p2) }
   0xc   : > { %1509 = vmatpush3.bf16.msra.mxu0 (!%p312_p2), %v1508_v19  ;;  %v1380_v44 = vld [vmem:[%s1781_s9] ss:$0 sm:$0xff] (!%p312_p2) }
   0xd   : > { %s1784_s14 = smov (!%p348_p3, %s1366_s14), 1  ;;  %1515 = vmatpush3.bf16.msra.mxu1 %v1514_v20  ;;  %1516 = vmatprep.subr.bf16.mxu0 %v1562_v10  ;;  %v713_v55 = vld [vmem:[%s1773_s1] sm:$0xff] }
   0xe   : > { %s1371_s15 = sshll.u32 %s1784_s14, 3  ;;  %1464 = vmatprep.subr.mxu1 %v1564_v18  ;;  %s1399_s22 = sshll.u32 %s1784_s14, 5 }
   0xf   : > { %s351_s18 = scalar_lea.vmem %s1772_s0, %s1371_s15  ;;  %s1565_s15 = smov 112  }
  0x10   : > { %v357_v0 = vld [vmem:[%s351_s18] sm:$0xff]  ;;  %s356_s25 = scalar_lea.vmem %s1782_s10, %s1399_s22 }
  0x11   : > { %v361_v1 = vsel %vm360_vm0, %v357_v0, 0.0 }
  0x12   : > { %362 = vadd.xlane.f32.xlu0 %v361_v1 }
  0x9f   : > { %v363_v2 = vpop.xlane.xlu0 %362 }
  0xa0   : > { %v365_v3 = vmul.f32 0.03125, %v363_v2 }
  0xa2   : > { %v366_v4 = vsub.f32 %v357_v0, %v365_v3 }
  0xa4   : > { %v367_v5 = vmul.f32 %v366_v4, %v366_v4 }
  0xa6   : > { %v368_v6 = vsel %vm360_vm0, %v367_v5, 0.0 }
  0xa7   : > { %369 = vadd.xlane.f32.xlu0 %v368_v6 }
 0x134   : > { %v370_v21 = vpop.xlane.xlu0 %369 }
 0x135   : > { %v371_v22 = vmul.f32 0.03125, %v370_v21 }
 0x137   : > { %v372_v23 = vadd.f32 1e-05, %v371_v22 }
 0x139   : > { %1536 = vrsqrt.f32 %v372_v23 }
 0x143   : > { %v1537_v24 = vpop.eup %1536 }
 0x144   : > { %v374_v26 = vmul.f32 %v1537_v24, %v366_v4 }
 0x146   : > { %v381_v30 = vmul.f32 %v1374_v25, %v374_v26 }
 0x148   : > { %v388_v32 = vadd.f32 %v1375_v29, %v381_v30 }
 0x14a   : > { %1440 = vmatmul.mubr.msk.f32.vlgmr.msra.gmra.mrb[0].mxu0 %vm360_vm0, %v388_v32  ;;  %1451 = vmatmul.mubr.msk.f32.vlgmr.msra.gmra.mrb[0].mxu1 %vm360_vm0, %v388_v32 }
 0x14b   : > { %1518 = vmatpush3.bf16.msra.mxu0 %v1517_v31  ;;  %1461 = vmatprep.mubr.msk.f32.mxu0 %vm1563_vm1, %v1564_v18 }
 0x14c   : > { %1519 = vmatprep.subr.bf16.mxu0 %v1562_v10  ;;  %1466 = vmatprep.mubr.msk.f32.mxu1 %vm1563_vm1, %v1564_v18 }
 0x14f   : > { %1521 = vmatpush3.bf16.msra.mxu0 %v1520_v35 }
 0x150   : > { %1474 = vmatprep.subr.mxu0 %v1564_v18 }
 0x152   : > { %1462 = vmatmul.mubr.msk.f32.vlgmr.msra.gmra.mrb[2].mxu0 %vm360_vm0, %v388_v32 }
 0x153   : > { %1476 = vmatprep.mubr.msk.f32.mxu0 %vm1563_vm1, %v1564_v18 }
 0x21d   : > { %v479_v37 = vpop.f32.mrb[0].mxu0  ;;  %v555_v38 = vpop.f32.mrb[0].mxu1 }
 0x21e   : > { %v556_v39 = vadd.f32 %v1378_v36, %v555_v38  ;;  %v1441_v40 = vpop.f32.mrb[1].mxu0  ;;  %v1452_v41 = vpop.f32.mrb[1].mxu1  ;;  %v480_v43 = vadd.f32 %v1376_v42, %v479_v37 }
 0x220   : > { %973 = vrot.lane.b32.xlu0 %v556_v39, %s1565_s15  ;;  %802 = vrot.lane.b32.xlu1 %v556_v39, %s1566_s16 }
 0x221   : > { %1465 = vmatpush3.xpose.msk.msra.mxu1 %vm635_vm2, %v556_v39 }
 0x222   : > { %1469 = vmatprep.subr.mxu1 %v1564_v18 }
 0x224   : > { %1467 = vmatmul.mubr.msk.f32.vlgmr.msra.gmra.mrb[2].mxu1 %vm635_vm2, %v480_v43  ;;  %800 = vrot.lane.b32.xlu1 %v480_v43, %s1566_s16 }
 0x225   : > { %v631_v45 = vpop.f32.mrb[2].mxu0  ;;  %1471 = vmatprep.mubr.msk.f32.mxu1 %vm1563_vm1, %v1564_v18 }
 0x226   : > { %v1713_v46 = vadd.f32 %v1380_v44, %v631_v45  ;;  %v1463_v47 = vpop.f32.mrb[3].mxu0 }
 0x228   : > { %1470 = vmatpush3.msra.mxu1 %v1713_v46  ;;  %971 = vrot.lane.b32.xlu1 %v480_v43, %s1565_s15 }
 0x229   : > { %1479 = vmatprep.subr.mxu1 %v1564_v18 }
 0x22c   : > { %1143 = vrot.lane.b32.xlu1 %v556_v39, %s1567_s19 }
 0x230   : > { %1141 = vrot.lane.b32.xlu1 %v480_v43, %s1567_s19 }
 0x292   : > { %v803_v48 = vpop.permute.xlu1 %802  ;;  %v974_v50 = vpop.permute.xlu0 %973 }
 0x293   : > { %1475 = vmatpush3.xpose.msk.msra.mxu0 %vm635_vm2, %v803_v48 }
 0x294   : > { %1484 = vmatprep.subr.mxu0 %v1564_v18 }
 0x296   : > { %v801_v49 = vpop.permute.xlu1 %800 }
 0x297   : > { %1477 = vmatmul.mubr.msk.f32.vlgmr.msra.gmra.mrb[4].mxu0 %vm635_vm2, %v801_v49 }
 0x298   : > { %1485 = vmatpush3.xpose.msk.msra.mxu0 %vm635_vm2, %v974_v50  ;;  %1486 = vmatprep.mubr.msk.f32.mxu0 %vm1563_vm1, %v1564_v18 }
 0x299   : > { %1494 = vmatprep.subr.mxu0 %v1564_v18 }
 0x29a   : > { %v972_v51 = vpop.permute.xlu1 %971 }
 0x29b   : > { %1487 = vmatmul.mubr.msk.f32.vlgmr.msra.gmra.mrb[6].mxu0 %vm635_vm2, %v972_v51 }
 0x29c   : > { %1496 = vmatprep.mubr.msk.f32.mxu0 %vm1563_vm1, %v1564_v18 }
 0x29e   : > { %v1144_v52 = vpop.permute.xlu1 %1143 }
 0x29f   : > { %1495 = vmatpush3.xpose.msk.msra.mxu0 %vm635_vm2, %v1144_v52 }
 0x2a2   : > { %v1142_v53 = vpop.permute.xlu1 %1141 }
 0x2a3   : > { %1497 = vmatmul.mubr.msk.f32.vlgmr.msra.gmra.mrb[8].mxu0 %vm635_vm2, %v1142_v53 }
 0x2f7   : > { %v708_v54 = vpop.f32.mrb[2].mxu1 }
 0x2f8   : > { %v712_v56 = vmul.f32 0.35355338, %v708_v54  ;;  %v1468_v57 = vpop.f32.mrb[3].mxu1 }
 0x2fa   : > { %v714_v58 = vadd.f32 %v713_v55, %v712_v56 }
 0x2fc   : > { %v715_v59 = vsel %vm635_vm2, %v714_v58, -inf }
 0x2fd   : > { %716 = vmax.xlane.f32.xlu1 %v715_v59 }
 0x36a   : > { %v874_v60 = vpop.f32.mrb[4].mxu0 }
 0x36b   : > { %v878_v61 = vmul.f32 0.35355338, %v874_v60  ;;  %v1478_v62 = vpop.f32.mrb[5].mxu0 }
 0x36d   : > { %v880_v63 = vadd.f32 %v878_v61, %v713_v55 }
 0x36e   : > { %v1045_v0 = vpop.f32.mrb[6].mxu0 }
 0x36f   : > { %v1049_v1 = vmul.f32 0.35355338, %v1045_v0  ;;  %v1488_v2 = vpop.f32.mrb[7].mxu0  ;;  %v881_v3 = vsel %vm635_vm2, %v880_v63, -inf }
 0x370   : > { %882 = vmax.xlane.f32.xlu0 %v881_v3 }
 0x371   : > { %v1051_v4 = vadd.f32 %v1049_v1, %v713_v55 }
 0x373   : > { %v1052_v5 = vsel %vm635_vm2, %v1051_v4, -inf }
 0x374   : > { %1053 = vmax.xlane.f32.xlu1 %v1052_v5 }
 0x376   : > { %v1215_v6 = vpop.f32.mrb[8].mxu0 }
 0x377   : > { %v1219_v7 = vmul.f32 0.35355338, %v1215_v6  ;;  %v1498_v8 = vpop.f32.mrb[9].mxu0 }
 0x379   : > { %v1221_v9 = vadd.f32 %v1219_v7, %v713_v55 }
 0x37b   : > { %v1222_v10 = vsel %vm635_vm2, %v1221_v9, -inf }
 0x37c   : > { %1223 = vmax.xlane.f32.xlu1 %v1222_v10 }
 0x38a   : > { %v717_v11 = vpop.xlane.xlu1 %716 }
 0x38b   : > { %v718_v12 = vsub.f32 %v714_v58, %v717_v11 }
 0x38d   : > { %v719_v13 = vmul.f32 1.442695, %v718_v12 }
 0x38f   : > { %1538 = vpow2.f32 %v719_v13 }
 0x399   : > { %v1539_v14 = vpop.eup %1538 }
 0x39a   : > { %v721_v15 = vsel %vm635_vm2, %v1539_v14, 0.0 }
 0x39b   : > { %722 = vadd.xlane.f32.xlu0 %v721_v15 }
 0x3fd   : > { %v883_v16 = vpop.xlane.xlu0 %882 }
 0x3fe   : > { %v884_v17 = vsub.f32 %v880_v63, %v883_v16 }
 0x400   : > { %v885_v19 = vmul.f32 1.442695, %v884_v17 }
 0x401   : > { %v1054_v20 = vpop.xlane.xlu1 %1053 }
 0x402   : > { %1540 = vpow2.f32 %v885_v19  ;;  %v1055_v21 = vsub.f32 %v1051_v4, %v1054_v20 }
 0x404   : > { %v1056_v22 = vmul.f32 1.442695, %v1055_v21 }
 0x406   : > { %1542 = vpow2.f32 %v1056_v22 }
 0x409   : > { %v1224_v28 = vpop.xlane.xlu1 %1223 }
 0x40a   : > { %v1225_v29 = vsub.f32 %v1221_v9, %v1224_v28 }
 0x40c   : > { %v1541_v23 = vpop.eup %1540  ;;  %v1226_v30 = vmul.f32 1.442695, %v1225_v29 }
 0x40d   : > { %v887_v24 = vsel %vm635_vm2, %v1541_v23, 0.0 }
 0x40e   : > { %888 = vadd.xlane.f32.xlu1 %v887_v24 }
 0x410   : > { %v1543_v25 = vpop.eup %1542 }
 0x411   : > { %v1058_v26 = vsel %vm635_vm2, %v1543_v25, 0.0 }
 0x412   : > { %1059 = vadd.xlane.f32.xlu0 %v1058_v26 }
 0x41f   : > { %1063 = vrot.lane.b32.xlu1 %v1713_v46, %s1565_s15 }
 0x428   : > { %v723_v27 = vpop.xlane.xlu0 %722  ;;  %893 = vrot.lane.b32.xlu0 %v1713_v46, %s1566_s16 }
 0x429   : > { %1544 = vrcp.f32 %v723_v27 }
 0x42a   : > { %1546 = vpow2.f32 %v1226_v30 }
 0x433   : > { %v1545_v31 = vpop.eup %1544 }
 0x434   : > { %v725_v32 = vmul.f32 %v1545_v31, %v1539_v14  ;;  %v1547_v33 = vpop.eup %1546 }
 0x435   : > { %v1228_v34 = vsel %vm635_vm2, %v1547_v33, 0.0 }
 0x436   : > { %1472 = vmatmul.mubr.msk.f32.vlgmr.msra.gmra.mrb[4].mxu1 %vm635_vm2, %v725_v32 }
 0x437   : > { %1481 = vmatprep.mubr.msk.f32.mxu1 %vm1563_vm1, %v1564_v18 }
 0x443   : > { %1229 = vadd.xlane.f32.xlu1 %v1228_v34 }
 0x454   : > { %1233 = vrot.lane.b32.xlu1 %v1713_v46, %s1567_s19 }
 0x49b   : > { %v889_v35 = vpop.xlane.xlu1 %888 }
 0x49c   : > { %1548 = vrcp.f32 %v889_v35 }
 0x49f   : > { %v1060_v36 = vpop.xlane.xlu0 %1059  ;;  %v1064_v40 = vpop.permute.xlu1 %1063 }
 0x4a0   : > { %1550 = vrcp.f32 %v1060_v36 }
 0x4a3   : > { %v894_v37 = vpop.permute.xlu0 %893 }
 0x4a4   : > { %1480 = vmatpush3.msra.mxu1 %v894_v37 }
 0x4a5   : > { %1489 = vmatprep.subr.mxu1 %v1564_v18 }
 0x4a6   : > { %v1549_v38 = vpop.eup %1548 }
 0x4a7   : > { %v891_v39 = vmul.f32 %v1549_v38, %v1541_v23 }
 0x4a9   : > { %1482 = vmatmul.mubr.msk.f32.vlgmr.msra.gmra.mrb[6].mxu1 %vm635_vm2, %v891_v39 }
 0x4aa   : > { %v1551_v41 = vpop.eup %1550  ;;  %1490 = vmatpush3.msra.mxu1 %v1064_v40  ;;  %1491 = vmatprep.mubr.msk.f32.mxu1 %vm1563_vm1, %v1564_v18 }
 0x4ab   : > { %v1062_v42 = vmul.f32 %v1551_v41, %v1543_v25  ;;  %1499 = vmatprep.subr.mxu1 %v1564_v18 }
 0x4ad   : > { %1492 = vmatmul.mubr.msk.f32.vlgmr.msra.gmra.mrb[8].mxu1 %vm635_vm2, %v1062_v42 }
 0x4ae   : > { %1501 = vmatprep.mubr.msk.f32.mxu1 %vm1563_vm1, %v1564_v18 }
 0x4d0   : > { %v1230_v43 = vpop.xlane.xlu1 %1229 }
 0x4d1   : > { %1552 = vrcp.f32 %v1230_v43 }
 0x4d4   : > { %v1234_v44 = vpop.permute.xlu1 %1233 }
 0x4d5   : > { %1500 = vmatpush3.msra.mxu1 %v1234_v44 }
 0x4db   : > { %v1553_v45 = vpop.eup %1552 }
 0x4dc   : > { %v1232_v46 = vmul.f32 %v1553_v45, %v1547_v33 }
 0x4de   : > { %1502 = vmatmul.mubr.msk.f32.vlgmr.msra.gmra.mrb[10].mxu1 %vm635_vm2, %v1232_v46 }
 0x509   : > { %v795_v47 = vpop.f32.mrb[4].mxu1 }
 0x50a   : > { %799 = vst.msk [vmem:[%s356_s25] sm:$0xff] %vm635_vm2, %v795_v47  ;;  %v1473_v48 = vpop.f32.mrb[5].mxu1 }
 0x57c   : > { %v965_v49 = vpop.f32.mrb[6].mxu1 }
 0x57d   : > { %1388 = vst.msk [vmem:[%s356_s25 + $0x8] sm:$0xff] %vm635_vm2, %v965_v49  ;;  %v1483_v18 = vpop.f32.mrb[7].mxu1 }
 0x580   : > { %v1135_v50 = vpop.f32.mrb[8].mxu1 }
 0x581   : > { %1392 = vst.msk [vmem:[%s356_s25 + $0x10] sm:$0xff] %vm635_vm2, %v1135_v50  ;;  %v1493_v51 = vpop.f32.mrb[9].mxu1 }
 0x5b1   : > { %v1305_v52 = vpop.f32.mrb[10].mxu1 }
 0x5b2   : > { %1396 = vst.msk [vmem:[%s356_s25 + $0x18] sm:$0xff] %vm635_vm2, %v1305_v52  ;;  %v1503_v53 = vpop.f32.mrb[11].mxu1 }
 0x5b3 PF: > { %s20_s13 = sadd.s32 1, %s1560_s13  }
 0x5b4   : > { %p17_p4 = scmp.ge.s32.totalorder %s20_s13, 4  }
 0x5b6   :  { %19 = sbr.rel (!%p17_p4) target bundleno = 1 (0x1), region = 93 }

// kernel: decoder.7
= control target key start
LH: loop header
LB: loop body
LE: loop exit
PB: predicated region body
PF: predicated region fallthrough
CT: control target
= control target key end

     0   :  { %s2002_s18 = smov 0   ;;  %s2187_s0 = inlined_call_operand.vmem [shape: f32[2,8,32], index: 0, kind: input, shape index: {}]   ;;  %s2188_s1 = inlined_call_operand.vmem [shape: f32[2,8,32], index: 1, kind: input, shape index: {}]   ;;  %s2189_s2 = inlined_call_operand.vmem [shape: f32[2,8,32], index: 2, kind: input, shape index: {}]   ;;  %s2190_s3 = inlined_call_operand.vmem [shape: f32[1,1,8,8], index: 3, kind: input, shape index: {}]   ;;  %s2191_s4 = inlined_call_operand.vmem [shape: f32[32,32], index: 4, kind: input, shape index: {}]   ;;  %s2192_s5 = inlined_call_operand.vmem [shape: f32[1,32], index: 5, kind: input, shape index: {}]   ;;  %s2193_s6 = inlined_call_operand.vmem [shape: f32[1,32], index: 6, kind: input, shape index: {}]   ;;  %s2194_s7 = inlined_call_operand.vmem [shape: f32[1,32], index: 7, kind: input, shape index: {}]   ;;  %s2195_s8 = inlined_call_operand.vmem [shape: f32[32,32], index: 8, kind: input, shape index: {}]   ;;  %s2196_s9 = inlined_call_operand.vmem [shape: f32[1,32], index: 9, kind: input, shape index: {}]   ;;  %s2197_s10 = inlined_call_operand.vmem [shape: f32[32,32], index: 10, kind: input, shape index: {}]   ;;  %s2198_s11 = inlined_call_operand.vmem [shape: f32[1,32], index: 11, kind: input, shape index: {}]   ;;  %s2199_s12 = inlined_call_operand.vmem [shape: f32[32,32], index: 12, kind: input, shape index: {}]   ;;  %s2200_s13 = inlined_call_operand.vmem [shape: f32[1,32], index: 13, kind: input, shape index: {}]   ;;  %s2201_s14 = inlined_call_operand.vmem [shape: f32[2,8,32], index: 14, kind: output, shape index: {0}]   ;;  %s2202_s15 = inlined_call_operand.vmem [shape: f32[2,4,8,8], index: 15, kind: output, shape index: {1}]  }
   0x1 LB: > { %s1693_s19 = sadd.s32 4294967295, %s1914_s18   ;;  %p1697_p0 = scmp.ge.s32.totalorder %s1914_s18, 1  ;;  %s1914_s18 = sphi %s2002_s18, %s26_s18  }
   0x2   : > { %p457_p1 = scmp.lt.s32.totalorder %s1914_s18, 3 }
   0x4   : > { %p458_p2 = pnand %p1697_p0, %p457_p1 }
   0x5   : > { %v539_v0 = vld [vmem:[%s2191_s4] sm:$0xff] (!%p458_p2)  ;;  %v540_v1 = vld [vmem:[%s2191_s4 + $0x8] sm:$0xff] (!%p458_p2)  ;;  %v541_v2 = vld [vmem:[%s2191_s4 + $0x10] sm:$0xff] (!%p458_p2)  ;;  %v1916_v3 = vmov (!%p458_p2), 0.0|0.0   ;;  %vm1917_vm0 = vmmov (!%p458_p2), 0   ;;  %v1918_v6 = vmov (!%p458_p2), 0.0  }
   0x6   : > { %461 = sbr.rel (%p458_p2) target bundleno = 1671 (0x687), region = 76  ;;  %1852 = vmatprep.subr.bf16.mxu0 (!%p458_p2), %v1916_v3  ;;  %v1853_v4 = vpack.c.bf16 (!%p458_p2), %v540_v1, %v539_v0  ;;  %v542_v5 = vld [vmem:[%s2191_s4 + $0x18] sm:$0xff] (!%p458_p2)  ;;  %1776 = vmatprep.mubr.msk.f32.mxu0 (!%p458_p2), %vm1917_vm0, %v1918_v6  ;;  %p516_p3 = scmp.lt.s32.totalorder (!%p458_p2), %s1693_s19, 1  ;;  %vm543_vm1 = vcmask (!%p458_p2), 261120   ;;  %v1705_v11 = vld [vmem:[%s2192_s5] ss:$0 sm:$0xff] (!%p458_p2) }
   0x7   : > { %1858 = vmatprep.subr.bf16.mxu1 (!%p458_p2), %v1916_v3  ;;  %1787 = vmatprep.mubr.msk.f32.mxu1 (!%p458_p2), %vm1917_vm0, %v1918_v6  ;;  %v1856_v7 = vpack.c.bf16 (!%p458_p2), %v542_v5, %v541_v2  ;;  %v663_v21 = vld [vmem:[%s2197_s10] sm:$0xff] (!%p458_p2)  ;;  %v664_v22 = vld [vmem:[%s2197_s10 + $0x8] sm:$0xff] (!%p458_p2)  ;;  %v665_v24 = vld [vmem:[%s2197_s10 + $0x10] sm:$0xff] (!%p458_p2)  ;;  %vm907_vm2 = vcmask (!%p458_p2), 64512   ;;  %s1919_s27 = smov (!%p458_p2), 120   ;;  %s1920_s29 = smov (!%p458_p2), 112  }
   0x8   : > { %1854 = vmatpush3.bf16.msra.mxu0 (!%p458_p2), %v1853_v4  ;;  %v1865_v23 = vpack.c.bf16 (!%p458_p2), %v664_v22, %v663_v21  ;;  %v666_v25 = vld [vmem:[%s2197_s10 + $0x18] sm:$0xff] (!%p458_p2)  ;;  %v658_v27 = vld [vmem:[%s2195_s8] sm:$0xff] (!%p458_p2)  ;;  %v659_v28 = vld [vmem:[%s2195_s8 + $0x8] sm:$0xff] (!%p458_p2)  ;;  %s1921_s30 = smov (!%p458_p2), 104  }
   0x9   : > { %1855 = vmatprep.subr.bf16.mxu0 (!%p458_p2), %v1916_v3  ;;  %v1868_v26 = vpack.c.bf16 (!%p458_p2), %v666_v25, %v665_v24  ;;  %v660_v29 = vld [vmem:[%s2195_s8 + $0x10] sm:$0xff] (!%p458_p2)  ;;  %v1859_v30 = vpack.c.bf16 (!%p458_p2), %v659_v28, %v658_v27  ;;  %v661_v31 = vld [vmem:[%s2195_s8 + $0x18] sm:$0xff] (!%p458_p2)  ;;  %v1706_v38 = vld [vmem:[%s2193_s6] ss:$0 sm:$0xff] (!%p458_p2) }
   0xa   : > { %v1862_v33 = vpack.c.bf16 (!%p458_p2), %v661_v31, %v660_v29  ;;  %v1707_v40 = vld [vmem:[%s2194_s7] ss:$0 sm:$0xff] (!%p458_p2)  ;;  %v669_v53 = vld [vmem:[%s2199_s12 + $0x8] sm:$0xff] (!%p458_p2)  ;;  %v670_v54 = vld [vmem:[%s2199_s12 + $0x10] sm:$0xff] (!%p458_p2) }
   0xb   : > { %1860 = vmatpush3.bf16.msra.mxu1 (!%p458_p2), %v1859_v30  ;;  %v1710_v43 = vld [vmem:[%s2198_s11] ss:$0 sm:$0xff] (!%p458_p2)  ;;  %v671_v56 = vld [vmem:[%s2199_s12 + $0x18] sm:$0xff] (!%p458_p2) }
   0xc   : > { %1857 = vmatpush3.bf16.msra.mxu0 (!%p458_p2), %v1856_v7  ;;  %1861 = vmatprep.subr.bf16.mxu1 (!%p458_p2), %v1916_v3  ;;  %v1708_v47 = vld [vmem:[%s2196_s9] ss:$0 sm:$0xff] (!%p458_p2)  ;;  %v1874_v57 = vpack.c.bf16 (!%p458_p2), %v671_v56, %v670_v54 }
   0xd   : > { %s2204_s19 = smov (!%p516_p3, %s1693_s19), 1  ;;  %1864 = vmatprep.subr.bf16.mxu0 %v1916_v3  ;;  %v668_v52 = vld [vmem:[%s2199_s12] sm:$0xff] }
   0xe   : > { %s2032_s28 = sshll.u32 %s2204_s19, 3  ;;  %v1871_v55 = vpack.c.bf16 %v669_v53, %v668_v52  ;;  %v985_v0 = vld [vmem:[%s2190_s3] sm:$0xff] }
   0xf   : > { %s523_s16 = scalar_lea.vmem %s2188_s1, %s2032_s28  ;;  %s519_s21 = scalar_lea.vmem %s2187_s0, %s2032_s28  ;;  %1863 = vmatpush3.bf16.msra.mxu1 %v1862_v33  ;;  %v1712_v24 = vld [vmem:[%s2200_s13] ss:$0 sm:$0xff] }
  0x10   : > { %v538_v8 = vld [vmem:[%s523_s16] sm:$0xff]  ;;  %s531_s26 = scalar_lea.vmem %s2201_s14, %s2032_s28  ;;  %s527_s25 = scalar_lea.vmem %s2189_s2, %s2032_s28  ;;  %1870 = vmatprep.subr.bf16.mxu1 %v1916_v3 }
  0x11   : > { %1777 = vmatmul.mubr.msk.f32.vlgmr.msra.gmra.mrb[0].mxu0 %vm543_vm1, %v538_v8  ;;  %v537_v9 = vld [vmem:[%s519_s21] sm:$0xff] }
  0x12   : > { %1798 = vmatprep.mubr.msk.f32.mxu0 %vm1917_vm0, %v1918_v6  ;;  %1866 = vmatpush3.bf16.msra.mxu0 %v1865_v23  ;;  %v657_v32 = vld [vmem:[%s527_s25] sm:$0xff] }
  0x13   : > { %1867 = vmatprep.subr.bf16.mxu0 %v1916_v3 }
  0x16   : > { %1869 = vmatpush3.bf16.msra.mxu0 %v1868_v26 }
  0x17   : > { %1812 = vmatprep.subr.mxu0 %v1918_v6 }
  0x19   : > { %1799 = vmatmul.mubr.msk.f32.vlgmr.msra.gmra.mrb[2].mxu0 %vm543_vm1, %v657_v32 }
  0x1a   : > { %1814 = vmatprep.mubr.msk.f32.mxu0 %vm1917_vm0, %v1918_v6 }
  0xe4   : > { %v613_v10 = vpop.f32.mrb[0].mxu0 }
  0xe5   : > { %v617_v12 = vadd.f32 %v613_v10, %v537_v9  ;;  %v1778_v13 = vpop.f32.mrb[1].mxu0 }
  0xe7   : > { %v625_v14 = vadd.f32 %v1705_v11, %v617_v12 }
  0xe9   : > { %626 = vst.msk [vmem:[%s531_s26] sm:$0xff] %vm543_vm1, %v625_v14  ;;  %v629_v15 = vsel %vm543_vm1, %v625_v14, 0.0 }
  0xea   : > { %630 = vadd.xlane.f32.xlu0 %v629_v15 }
  0xec   : > { %v827_v44 = vpop.f32.mrb[2].mxu0 }
  0xed   : > { %v828_v45 = vadd.f32 %v1710_v43, %v827_v44  ;;  %v1800_v46 = vpop.f32.mrb[3].mxu0 }
  0xef   : > { %1074 = vrot.lane.b32.xlu1 %v828_v45, %s1919_s27  ;;  %1813 = vmatpush3.xpose.msk.msra.mxu0 %vm907_vm2, %v828_v45 }
  0xf0   : > { %1822 = vmatprep.subr.mxu0 %v1918_v6 }
  0xf3   : > { %1415 = vrot.lane.b32.xlu1 %v828_v45, %s1921_s30 }
 0x161   : > { %v1075_v51 = vpop.permute.xlu1 %1074 }
 0x165   : > { %v1416_v58 = vpop.permute.xlu1 %1415 }
 0x177   : > { %v631_v16 = vpop.xlane.xlu0 %630 }
 0x178   : > { %v633_v17 = vmul.f32 0.03125, %v631_v16 }
 0x17a   : > { %v634_v18 = vsub.f32 %v625_v14, %v633_v17 }
 0x17c   : > { %v635_v19 = vmul.f32 %v634_v18, %v634_v18 }
 0x17e   : > { %v636_v20 = vsel %vm543_vm1, %v635_v19, 0.0 }
 0x17f   : > { %637 = vadd.xlane.f32.xlu0 %v636_v20 }
 0x195   : > { %1245 = vrot.lane.b32.xlu0 %v828_v45, %s1920_s29 }
 0x20c   : > { %v638_v34 = vpop.xlane.xlu0 %637 }
 0x20d   : > { %v639_v35 = vmul.f32 0.03125, %v638_v34 }
 0x20f   : > { %v640_v36 = vadd.f32 1e-05, %v639_v35 }
 0x210   : > { %v1246_v60 = vpop.permute.xlu0 %1245 }
 0x211   : > { %1890 = vrsqrt.f32 %v640_v36 }
 0x21b   : > { %v1891_v37 = vpop.eup %1890 }
 0x21c   : > { %v642_v39 = vmul.f32 %v1891_v37, %v634_v18 }
 0x21e   : > { %v649_v41 = vmul.f32 %v1706_v38, %v642_v39 }
 0x220   : > { %v656_v42 = vadd.f32 %v1707_v40, %v649_v41 }
 0x222   : > { %1788 = vmatmul.mubr.msk.f32.vlgmr.msra.gmra.mrb[0].mxu1 %vm543_vm1, %v656_v42 }
 0x223   : > { %1809 = vmatprep.mubr.msk.f32.mxu1 %vm1917_vm0, %v1918_v6  ;;  %1872 = vmatpush3.bf16.msra.mxu1 %v1871_v55 }
 0x224   : > { %1873 = vmatprep.subr.bf16.mxu1 %v1916_v3 }
 0x227   : > { %1875 = vmatpush3.bf16.msra.mxu1 %v1874_v57 }
 0x228   : > { %1817 = vmatprep.subr.mxu1 %v1918_v6 }
 0x22a   : > { %1810 = vmatmul.mubr.msk.f32.vlgmr.msra.gmra.mrb[2].mxu1 %vm543_vm1, %v657_v32 }
 0x22b   : > { %1819 = vmatprep.mubr.msk.f32.mxu1 %vm1917_vm0, %v1918_v6 }
 0x2f5   : > { %v748_v48 = vpop.f32.mrb[0].mxu1 }
 0x2f6   : > { %v749_v49 = vadd.f32 %v1708_v47, %v748_v48  ;;  %v1789_v50 = vpop.f32.mrb[1].mxu1 }
 0x2f8   : > { %1072 = vrot.lane.b32.xlu1 %v749_v49, %s1919_s27  ;;  %1815 = vmatmul.mubr.msk.f32.vlgmr.msra.gmra.mrb[4].mxu0 %vm907_vm2, %v749_v49 }
 0x2f9   : > { %1823 = vmatpush3.xpose.msk.msra.mxu0 %vm907_vm2, %v1075_v51  ;;  %1824 = vmatprep.mubr.msk.f32.mxu0 %vm1917_vm0, %v1918_v6 }
 0x2fa   : > { %1832 = vmatprep.subr.mxu0 %v1918_v6 }
 0x2fc   : > { %1243 = vrot.lane.b32.xlu1 %v749_v49, %s1920_s29 }
 0x2fd   : > { %v903_v25 = vpop.f32.mrb[2].mxu1 }
 0x2fe   : > { %v904_v26 = vadd.f32 %v1712_v24, %v903_v25  ;;  %v1811_v27 = vpop.f32.mrb[3].mxu1 }
 0x300   : > { %1413 = vrot.lane.b32.xlu1 %v749_v49, %s1921_s30  ;;  %1818 = vmatpush3.msra.mxu1 %v904_v26 }
 0x301   : > { %1827 = vmatprep.subr.mxu1 %v1918_v6 }
 0x36a   : > { %v1073_v59 = vpop.permute.xlu1 %1072 }
 0x36b   : > { %1825 = vmatmul.mubr.msk.f32.vlgmr.msra.gmra.mrb[6].mxu0 %vm907_vm2, %v1073_v59 }
 0x36c   : > { %1833 = vmatpush3.xpose.msk.msra.mxu0 %vm907_vm2, %v1246_v60  ;;  %1834 = vmatprep.mubr.msk.f32.mxu0 %vm1917_vm0, %v1918_v6 }
 0x36d   : > { %1842 = vmatprep.subr.mxu0 %v1918_v6 }
 0x36e   : > { %v1244_v61 = vpop.permute.xlu1 %1243 }
 0x36f   : > { %1835 = vmatmul.mubr.msk.f32.vlgmr.msra.gmra.mrb[8].mxu0 %vm907_vm2, %v1244_v61 }
 0x370   : > { %1843 = vmatpush3.xpose.msk.msra.mxu0 %vm907_vm2, %v1416_v58  ;;  %1844 = vmatprep.mubr.msk.f32.mxu0 %vm1917_vm0, %v1918_v6 }
 0x372   : > { %v1414_v62 = vpop.permute.xlu1 %1413 }
 0x373   : > { %1845 = vmatmul.mubr.msk.f32.vlgmr.msra.gmra.mrb[10].mxu0 %vm907_vm2, %v1414_v62 }
 0x3cb   : > { %v980_v63 = vpop.f32.mrb[4].mxu0 }
 0x3cc   : > { %v984_v1 = vmul.f32 0.35355338, %v980_v63  ;;  %v1816_v2 = vpop.f32.mrb[5].mxu0 }
 0x3ce   : > { %v986_v3 = vadd.f32 %v985_v0, %v984_v1 }
 0x3d0   : > { %v987_v4 = vsel %vm907_vm2, %v986_v3, -inf }
 0x3d1   : > { %988 = vmax.xlane.f32.xlu1 %v987_v4 }
 0x43e   : > { %v1146_v5 = vpop.f32.mrb[6].mxu0 }
 0x43f   : > { %v1150_v7 = vmul.f32 0.35355338, %v1146_v5  ;;  %v1826_v8 = vpop.f32.mrb[7].mxu0 }
 0x441   : > { %v1152_v9 = vadd.f32 %v1150_v7, %v985_v0 }
 0x442   : > { %v1317_v10 = vpop.f32.mrb[8].mxu0 }
 0x443   : > { %v1321_v11 = vmul.f32 0.35355338, %v1317_v10  ;;  %v1836_v12 = vpop.f32.mrb[9].mxu0  ;;  %v1153_v13 = vsel %vm907_vm2, %v1152_v9, -inf }
 0x444   : > { %1154 = vmax.xlane.f32.xlu0 %v1153_v13 }
 0x445   : > { %v1323_v14 = vadd.f32 %v1321_v11, %v985_v0 }
 0x446   : > { %v1487_v15 = vpop.f32.mrb[10].mxu0 }
 0x447   : > { %v1491_v16 = vmul.f32 0.35355338, %v1487_v15  ;;  %v1846_v17 = vpop.f32.mrb[11].mxu0  ;;  %v1324_v18 = vsel %vm907_vm2, %v1323_v14, -inf }
 0x448   : > { %1325 = vmax.xlane.f32.xlu1 %v1324_v18 }
 0x449   : > { %v1493_v19 = vadd.f32 %v1491_v16, %v985_v0 }
 0x44b   : > { %v1494_v20 = vsel %vm907_vm2, %v1493_v19, -inf }
 0x44c   : > { %1495 = vmax.xlane.f32.xlu1 %v1494_v20 }
 0x45e   : > { %v989_v21 = vpop.xlane.xlu1 %988 }
 0x45f   : > { %v990_v22 = vsub.f32 %v986_v3, %v989_v21 }
 0x461   : > { %v991_v23 = vmul.f32 1.442695, %v990_v22 }
 0x463   : > { %1892 = vpow2.f32 %v991_v23 }
 0x46d   : > { %v1893_v28 = vpop.eup %1892 }
 0x46e   : > { %v993_v29 = vsel %vm907_vm2, %v1893_v28, 0.0 }
 0x46f   : > { %994 = vadd.xlane.f32.xlu0 %v993_v29 }
 0x4d1   : > { %v1155_v30 = vpop.xlane.xlu0 %1154 }
 0x4d2   : > { %v1156_v31 = vsub.f32 %v1152_v9, %v1155_v30 }
 0x4d4   : > { %v1157_v32 = vmul.f32 1.442695, %v1156_v31 }
 0x4d5   : > { %v1326_v33 = vpop.xlane.xlu1 %1325 }
 0x4d6   : > { %1894 = vpow2.f32 %v1157_v32  ;;  %v1327_v34 = vsub.f32 %v1323_v14, %v1326_v33 }
 0x4d8   : > { %v1328_v35 = vmul.f32 1.442695, %v1327_v34 }
 0x4d9   : > { %v1496_v41 = vpop.xlane.xlu1 %1495 }
 0x4da   : > { %1896 = vpow2.f32 %v1328_v35  ;;  %v1497_v42 = vsub.f32 %v1493_v19, %v1496_v41 }
 0x4dc   : > { %v1498_v43 = vmul.f32 1.442695, %v1497_v42 }
 0x4e0   : > { %v1895_v36 = vpop.eup %1894 }
 0x4e1   : > { %v1159_v37 = vsel %vm907_vm2, %v1895_v36, 0.0 }
 0x4e2   : > { %1160 = vadd.xlane.f32.xlu1 %v1159_v37 }
 0x4e4   : > { %v1897_v38 = vpop.eup %1896 }
 0x4e5   : > { %v1330_v39 = vsel %vm907_vm2, %v1897_v38, 0.0 }
 0x4e6   : > { %1331 = vadd.xlane.f32.xlu0 %v1330_v39 }
 0x4f3   : > { %1335 = vrot.lane.b32.xlu1 %v904_v26, %s1920_s29 }
 0x4fc   : > { %1165 = vrot.lane.b32.xlu0 %v904_v26, %s1919_s27  ;;  %v995_v40 = vpop.xlane.xlu0 %994  ;;  %s1731_s27 = sshll.u32 %s2204_s19, 5 }
 0x4fd   : > { %1898 = vrcp.f32 %v995_v40  ;;  %s536_s28 = scalar_lea.vmem %s2202_s15, %s1731_s27 }
 0x4fe   : > { %1900 = vpow2.f32 %v1498_v43 }
 0x507   : > { %v1899_v44 = vpop.eup %1898 }
 0x508   : > { %v997_v45 = vmul.f32 %v1899_v44, %v1893_v28  ;;  %v1901_v46 = vpop.eup %1900 }
 0x509   : > { %v1500_v47 = vsel %vm907_vm2, %v1901_v46, 0.0 }
 0x50a   : > { %1820 = vmatmul.mubr.msk.f32.vlgmr.msra.gmra.mrb[4].mxu1 %vm907_vm2, %v997_v45 }
 0x50b   : > { %1829 = vmatprep.mubr.msk.f32.mxu1 %vm1917_vm0, %v1918_v6 }
 0x517   : > { %1501 = vadd.xlane.f32.xlu1 %v1500_v47 }
 0x528   : > { %1505 = vrot.lane.b32.xlu1 %v904_v26, %s1921_s30 }
 0x56f   : > { %v1161_v48 = vpop.xlane.xlu1 %1160 }
 0x570   : > { %1902 = vrcp.f32 %v1161_v48 }
 0x573   : > { %v1332_v49 = vpop.xlane.xlu0 %1331  ;;  %v1336_v53 = vpop.permute.xlu1 %1335 }
 0x574   : > { %1904 = vrcp.f32 %v1332_v49 }
 0x577   : > { %v1166_v50 = vpop.permute.xlu0 %1165 }
 0x578   : > { %1828 = vmatpush3.msra.mxu1 %v1166_v50 }
 0x579   : > { %1837 = vmatprep.subr.mxu1 %v1918_v6 }
 0x57a   : > { %v1903_v51 = vpop.eup %1902 }
 0x57b   : > { %v1163_v52 = vmul.f32 %v1903_v51, %v1895_v36 }
 0x57d   : > { %1830 = vmatmul.mubr.msk.f32.vlgmr.msra.gmra.mrb[6].mxu1 %vm907_vm2, %v1163_v52 }
 0x57e   : > { %v1905_v54 = vpop.eup %1904  ;;  %1838 = vmatpush3.msra.mxu1 %v1336_v53  ;;  %1839 = vmatprep.mubr.msk.f32.mxu1 %vm1917_vm0, %v1918_v6 }
 0x57f   : > { %v1334_v55 = vmul.f32 %v1905_v54, %v1897_v38  ;;  %1847 = vmatprep.subr.mxu1 %v1918_v6 }
 0x581   : > { %1840 = vmatmul.mubr.msk.f32.vlgmr.msra.gmra.mrb[8].mxu1 %vm907_vm2, %v1334_v55 }
 0x582   : > { %1849 = vmatprep.mubr.msk.f32.mxu1 %vm1917_vm0, %v1918_v6 }
 0x5a4   : > { %v1502_v56 = vpop.xlane.xlu1 %1501 }
 0x5a5   : > { %1906 = vrcp.f32 %v1502_v56 }
 0x5a8   : > { %v1506_v57 = vpop.permute.xlu1 %1505 }
 0x5a9   : > { %1848 = vmatpush3.msra.mxu1 %v1506_v57 }
 0x5af   : > { %v1907_v58 = vpop.eup %1906 }
 0x5b0   : > { %v1504_v59 = vmul.f32 %v1907_v58, %v1901_v46 }
 0x5b2   : > { %1850 = vmatmul.mubr.msk.f32.vlgmr.msra.gmra.mrb[10].mxu1 %vm907_vm2, %v1504_v59 }
 0x5dd   : > { %v1067_v60 = vpop.f32.mrb[4].mxu1 }
 0x5de   : > { %1071 = vst.msk [vmem:[%s536_s28] sm:$0xff] %vm907_vm2, %v1067_v60  ;;  %v1821_v61 = vpop.f32.mrb[5].mxu1 }
 0x650   : > { %v1237_v62 = vpop.f32.mrb[6].mxu1 }
 0x651   : > { %1720 = vst.msk [vmem:[%s536_s28 + $0x8] sm:$0xff] %vm907_vm2, %v1237_v62  ;;  %v1831_v6 = vpop.f32.mrb[7].mxu1 }
 0x654   : > { %v1407_v63 = vpop.f32.mrb[8].mxu1 }
 0x655   : > { %1724 = vst.msk [vmem:[%s536_s28 + $0x10] sm:$0xff] %vm907_vm2, %v1407_v63  ;;  %v1841_v0 = vpop.f32.mrb[9].mxu1 }
 0x685   : > { %v1577_v1 = vpop.f32.mrb[10].mxu1 }
 0x686   : > { %1728 = vst.msk [vmem:[%s536_s28 + $0x18] sm:$0xff] %vm907_vm2, %v1577_v1  ;;  %v1851_v2 = vpop.f32.mrb[11].mxu1 }
 0x687 PF: > { %s26_s18 = sadd.s32 1, %s1914_s18  }
 0x688   : > { %p23_p4 = scmp.ge.s32.totalorder %s26_s18, 4  }
 0x68a   :  { %25 = sbr.rel (!%p23_p4) target bundleno = 1 (0x1), region = 127 }

</bundles_post_ra>
